<compile_context>
chip_gen: v7x
topology: tpu7x:2x2x1
jax: 0.10.0
libtpu: 0.0.40
codegen_flags: <defaults>
</compile_context>

<pallas_src>
import jax
import jax.numpy as jnp
from jax.experimental import pallas as pl
from jax.experimental.pallas import tpu as pltpu


def _ceil_div(a, b):
    return -(-a // b)


def _choose_hw_tile(hw, bytes_per_lane, batch, budget=12 * 1024 * 1024):
    """Largest lane-dense HW tile that fits the per-step VMEM budget.

    Prefers the full HW extent, otherwise any 128-multiple divisor of HW,
    otherwise a budget-capped multiple of 128 (Pallas masks the ragged tail).
    Keeps batch * num_tiles >= 2 so both v7x TensorCores get work.
    """
    max_lanes = max(128, int(budget // max(bytes_per_lane, 1)))
    cands = []
    if hw <= max_lanes:
        cands.append(hw)
    if hw % 128 == 0:
        lim = min(hw, max_lanes)
        cands += sorted((d for d in range(128, lim + 1, 128) if hw % d == 0),
                        reverse=True)
    if not cands:
        cands = [min(hw, (max_lanes // 128) * 128)]
    seen, ordered = set(), []
    for t in cands:
        if t not in seen:
            seen.add(t)
            ordered.append(t)
    tile = ordered[0]
    if batch * _ceil_div(hw, tile) < 2:          # keep both v7x cores busy
        for t in ordered:
            if _ceil_div(hw, t) >= 2:
                tile = t
                break
    return tile


# --------------------------------------------------------------------------
# Pallas kernel A: c1_ = W1 @ x + b1   (1x1 conv, lane-dense over HW)
# --------------------------------------------------------------------------
def _conv1_kernel(x_ref, w1_ref, b1_ref, o_ref):
    x = x_ref[0]                                                    # (C, T)
    c1 = jnp.dot(w1_ref[...], x, preferred_element_type=jnp.float32)
    o_ref[0] = (c1 + b1_ref[...]).astype(o_ref.dtype)


def _conv1x1(x_flat, w1, b1, tile):
    B, C, HW = x_flat.shape
    f = w1.shape[0]
    nt = _ceil_div(HW, tile)
    flops = 2 * B * HW * f * C
    bytes_acc = 4 * (B * HW * (C + f) + f * C + f)
    return pl.pallas_call(
        _conv1_kernel,
        out_shape=jax.ShapeDtypeStruct((B, f, HW), x_flat.dtype),
        grid_spec=pltpu.PrefetchScalarGridSpec(
            num_scalar_prefetch=0,
            grid=(nt, B),
            in_specs=[
                pl.BlockSpec((1, C, tile), lambda i, b: (b, 0, i)),
                pl.BlockSpec((f, C), lambda i, b: (0, 0)),
                pl.BlockSpec((f, 1), lambda i, b: (0, 0)),
            ],
            out_specs=pl.BlockSpec((1, f, tile), lambda i, b: (b, 0, i)),
        ),
        compiler_params=pltpu.CompilerParams(
            dimension_semantics=("parallel", "parallel")),
        cost_estimate=pl.CostEstimate(flops=int(flops), transcendentals=0,
                                      bytes_accessed=int(bytes_acc)),
    )(x_flat, w1, b1.reshape(f, 1))


# --------------------------------------------------------------------------
# Pallas kernel B (fused):
#   c1 = W1 @ x + b1 ; cf = Wf @ c1 + bf          (recomputed, no HBM hop)
#   up = c3_small @ L^T                           (bilinear upsample, fused)
#   out = x * sigmoid(W4 @ (up + cf) + b4)
# --------------------------------------------------------------------------
def _attn_fused_kernel(x_ref, c3_ref, lt_ref, w1_ref, b1_ref, wf_ref, bf_ref,
                       w4_ref, b4_ref, o_ref):
    x = x_ref[0]                                                    # (C, T)
    c1 = jnp.dot(w1_ref[...], x,
                 preferred_element_type=jnp.float32) + b1_ref[...]  # (f, T)
    cf = jnp.dot(wf_ref[...], c1,
                 preferred_element_type=jnp.float32) + bf_ref[...]  # (f, T)
    up = jnp.dot(c3_ref[0], lt_ref[...],
                 preferred_element_type=jnp.float32)                 # (f, T)
    c4 = jnp.dot(w4_ref[...], cf + up,
                 preferred_element_type=jnp.float32) + b4_ref[...]  # (C, T)
    o_ref[0] = (x * jax.nn.sigmoid(c4)).astype(o_ref.dtype)


def _attn_apply(x_flat, c3_flat, lt, w1, b1, wf, bf, w4, b4, tile):
    B, C, HW = x_flat.shape
    f = w1.shape[0]
    hw_s = lt.shape[0]
    nt = _ceil_div(HW, tile)
    flops = 2 * B * HW * f * (2 * C + f + hw_s) + 5 * B * HW * C
    transc = B * HW * C
    bytes_acc = 4 * (2 * B * HW * C + hw_s * HW + B * f * hw_s
                     + f * C + f * f + C * f + 2 * f + C)
    return pl.pallas_call(
        _attn_fused_kernel,
        out_shape=jax.ShapeDtypeStruct((B, C, HW), x_flat.dtype),
        grid_spec=pltpu.PrefetchScalarGridSpec(
            num_scalar_prefetch=0,
            # HW tile outermost -> the (hw_s, tile) upsample operator block is
            # revisited across the inner batch axis and DMA'd only once.
            grid=(nt, B),
            in_specs=[
                pl.BlockSpec((1, C, tile), lambda i, b: (b, 0, i)),
                pl.BlockSpec((1, f, hw_s), lambda i, b: (b, 0, 0)),
                pl.BlockSpec((hw_s, tile), lambda i, b: (0, i)),
                pl.BlockSpec((f, C), lambda i, b: (0, 0)),
                pl.BlockSpec((f, 1), lambda i, b: (0, 0)),
                pl.BlockSpec((f, f), lambda i, b: (0, 0)),
                pl.BlockSpec((f, 1), lambda i, b: (0, 0)),
                pl.BlockSpec((C, f), lambda i, b: (0, 0)),
                pl.BlockSpec((C, 1), lambda i, b: (0, 0)),
            ],
            out_specs=pl.BlockSpec((1, C, tile), lambda i, b: (b, 0, i)),
        ),
        compiler_params=pltpu.CompilerParams(
            dimension_semantics=("parallel", "parallel")),
        cost_estimate=pl.CostEstimate(flops=int(flops),
                                      transcendentals=int(transc),
                                      bytes_accessed=int(bytes_acc)),
    )(x_flat, c3_flat, lt, w1, b1.reshape(f, 1), wf, bf.reshape(f, 1),
      w4, b4.reshape(C, 1))


# --------------------------------------------------------------------------
# Small-spatial helpers (plain XLA): tiny FLOPs, done once per forward.
# --------------------------------------------------------------------------
def _conv2d_nchw(x, w, b, stride=1, padding=((0, 0), (0, 0))):
    y = jax.lax.conv_general_dilated(
        x, w, window_strides=(stride, stride), padding=padding,
        dimension_numbers=("NCHW", "OIHW", "NCHW"))
    return y + b[None, :, None, None]


def _max_pool(x, k, s):
    return jax.lax.reduce_window(
        x, -jnp.inf, jax.lax.max,
        window_dimensions=(1, 1, k, k), window_strides=(1, 1, s, s),
        padding="VALID")


def _bilinear_matrix(out_size, in_size):
    # Interpolation matrix matching PyTorch F.interpolate(align_corners=False).
    scale = in_size / out_size
    dst = jnp.arange(out_size, dtype=jnp.float32)
    src = jnp.maximum((dst + 0.5) * scale - 0.5, 0.0)
    i0 = jnp.clip(jnp.floor(src).astype(jnp.int32), 0, in_size - 1)
    i1 = jnp.minimum(i0 + 1, in_size - 1)
    frac = src - i0.astype(jnp.float32)
    rows = jnp.arange(out_size)
    m = jnp.zeros((out_size, in_size), jnp.float32)
    m = m.at[rows, i0].add(1.0 - frac)
    m = m.at[rows, i1].add(frac)
    return m


# --------------------------------------------------------------------------
# ESA forward (Pallas full-res stages + tiny XLA spatial branch)
# --------------------------------------------------------------------------
def esa_forward(x, params):
    B, C, H, W = x.shape
    f = params["w1"].shape[0]
    HW = H * W
    x_flat = x.reshape(B, C, HW)

    # Stage 1 (Pallas): c1_ = conv1(x), 1x1 conv, lane-dense over HW.
    tile_a = _choose_hw_tile(HW, bytes_per_lane=4 * 2 * (C + f), batch=B)
    c1_flat = _conv1x1(x_flat, params["w1"][:, :, 0, 0], params["b1"], tile_a)
    c1_ = c1_flat.reshape(B, f, H, W)

    # Stage 2 (XLA): tiny downsampled branch.
    # TODO(synk): the stride-2/3x3 convs and the 7x7 stride-3 max-pool on the
    # ~6x6 map are left to XLA (negligible cost; no lane-dense Pallas win).
    c1 = _conv2d_nchw(c1_, params["w2"], params["b2"], stride=2)
    v_max = _max_pool(c1, 7, 3)
    v_range = jax.nn.relu(_conv2d_nchw(v_max, params["wmax"], params["bmax"],
                                       padding=((1, 1), (1, 1))))
    c3 = jax.nn.relu(_conv2d_nchw(v_range, params["w3"], params["b3"],
                                  padding=((1, 1), (1, 1))))
    c3 = _conv2d_nchw(c3, params["w3_"], params["b3_"],
                      padding=((1, 1), (1, 1)))
    hs, ws = c3.shape[2], c3.shape[3]
    c3_flat = c3.reshape(B, f, hs * ws)

    # Bilinear upsample as one (hw_small, HW) operator = kron(lh, lw), applied
    # inside kernel B so c3_up never materializes in HBM.
    lh = _bilinear_matrix(H, hs)
    lw = _bilinear_matrix(W, ws)
    lt = jnp.einsum("Hh,Ww->hwHW", lh, lw).reshape(hs * ws, HW)

    # Stage 3 (Pallas): out = x * sigmoid(conv4(upsample(c3) + conv_f(conv1(x)))).
    bytes_per_lane_b = 4 * (2 * (2 * C + hs * ws) + (C + 4 * f))
    tile_b = _choose_hw_tile(HW, bytes_per_lane=bytes_per_lane_b, batch=B)
    out_flat = _attn_apply(
        x_flat, c3_flat, lt,
        params["w1"][:, :, 0, 0], params["b1"],
        params["wf"][:, :, 0, 0], params["bf"],
        params["w4"][:, :, 0, 0], params["b4"],
        tile_b)
    return out_flat.reshape(B, C, H, W)


# --------------------------------------------------------------------------
# Pure-XLA reference (lax convolutions end-to-end) for validation.
# --------------------------------------------------------------------------
def esa_reference(x, params):
    B, C, H, W = x.shape
    c1_ = _conv2d_nchw(x, params["w1"], params["b1"])
    c1 = _conv2d_nchw(c1_, params["w2"], params["b2"], stride=2)
    v_max = _max_pool(c1, 7, 3)
    v_range = jax.nn.relu(_conv2d_nchw(v_max, params["wmax"], params["bmax"],
                                       padding=((1, 1), (1, 1))))
    c3 = jax.nn.relu(_conv2d_nchw(v_range, params["w3"], params["b3"],
                                  padding=((1, 1), (1, 1))))
    c3 = _conv2d_nchw(c3, params["w3_"], params["b3_"],
                      padding=((1, 1), (1, 1)))
    lh = _bilinear_matrix(H, c3.shape[2])
    lw = _bilinear_matrix(W, c3.shape[3])
    c3_up = jnp.einsum("Hh,bfhw,Ww->bfHW", lh, c3, lw)
    cf = _conv2d_nchw(c1_, params["wf"], params["bf"])
    c4 = _conv2d_nchw(c3_up + cf, params["w4"], params["b4"])
    return x * jax.nn.sigmoid(c4)


if __name__ == "__main__":
    B, C, H, W = 2, 32, 48, 48       # n_feats=32 -> f=8; HW=2304=18*128
    f = C // 4

    key = jax.random.PRNGKey(0)
    ks = jax.random.split(key, 15)

    def nrm(k, shape, scale):
        return jax.random.normal(k, shape, dtype=jnp.float32) * scale

    params = {
        "w1":   nrm(ks[0],  (f, C, 1, 1), 0.10), "b1":   nrm(ks[1],  (f,), 0.05),
        "wf":   nrm(ks[2],  (f, f, 1, 1), 0.10), "bf":   nrm(ks[3],  (f,), 0.05),
        "w2":   nrm(ks[4],  (f, f, 3, 3), 0.10), "b2":   nrm(ks[5],  (f,), 0.05),
        "wmax": nrm(ks[6],  (f, f, 3, 3), 0.10), "bmax": nrm(ks[7],  (f,), 0.05),
        "w3":   nrm(ks[8],  (f, f, 3, 3), 0.10), "b3":   nrm(ks[9],  (f,), 0.05),
        "w3_":  nrm(ks[10], (f, f, 3, 3), 0.10), "b3_":  nrm(ks[11], (f,), 0.05),
        "w4":   nrm(ks[12], (C, f, 1, 1), 0.10), "b4":   nrm(ks[13], (C,), 0.05),
    }
    x = nrm(ks[14], (B, C, H, W), 1.0)

    out = jax.block_until_ready(jax.jit(esa_forward)(x, params))
    ref = jax.block_until_ready(jax.jit(esa_reference)(x, params))

    assert out.shape == (B, C, H, W)
    max_err = float(jnp.max(jnp.abs(out - ref)))
    assert jnp.allclose(out, ref, atol=1e-4, rtol=1e-4), max_err
    print("KERNEL_OK")
</pallas_src>

<mosaic_0001>
module attributes {stable_mosaic.version = 11 : i64} {
  func.func private @main(%arg0: i32) attributes {dimension_semantics = [#tpu.dimension_semantics<core_parallel>], iteration_bounds = array<i64: 2>, tpu.core_type = #tpu.core_type<sc_scalar_subcore>, window_params = []} {
    return
  }
}

module attributes {stable_mosaic.version = 11 : i64} {
  func.func private @main(%arg0: i32) attributes {dimension_semantics = [#tpu.dimension_semantics<core_parallel>], iteration_bounds = array<i64: 2>, tpu.core_type = #tpu.core_type<sc_scalar_subcore>, window_params = []} {
    return
  }
}

module attributes {stable_mosaic.version = 11 : i64} {
  func.func @_conv1_kernel(%arg0: i32, %arg1: i32, %arg2: memref<1x32x2304xf32, #tpu.memory_space<vmem>>, %arg3: memref<8x32xf32, #tpu.memory_space<vmem>>, %arg4: memref<8x1xf32, #tpu.memory_space<vmem>>, %arg5: memref<1x8x2304xf32, #tpu.memory_space<vmem>>) attributes {dimension_semantics = [#tpu.dimension_semantics<parallel>, #tpu.dimension_semantics<parallel>], iteration_bounds = array<i64: 1, 2>, scalar_prefetch = 0 : i64, scratch_operands = 0 : i64, tpu.core_type = #tpu.core_type<tc>, window_params = [{transform_indices = @transform_0, window_bounds = array<i64: 1, 32, 2304>}, {pipeline_mode = #tpu.pipeline_mode<synchronous>, transform_indices = @transform_1, window_bounds = array<i64: 8, 32>}, {pipeline_mode = #tpu.pipeline_mode<synchronous>, transform_indices = @transform_2, window_bounds = array<i64: 8, 1>}, {transform_indices = @transform_3, window_bounds = array<i64: 1, 8, 2304>}]} {
    %c0 = arith.constant 0 : index
    %c0_0 = arith.constant 0 : index
    %c0_1 = arith.constant 0 : index
    %0 = vector.load %arg2[%c0, %c0_0, %c0_1] : memref<1x32x2304xf32, #tpu.memory_space<vmem>>, vector<1x32x2304xf32>
    %1 = vector.shape_cast %0 : vector<1x32x2304xf32> to vector<32x2304xf32>
    %c0_2 = arith.constant 0 : index
    %c0_3 = arith.constant 0 : index
    %2 = vector.load %arg3[%c0_2, %c0_3] : memref<8x32xf32, #tpu.memory_space<vmem>>, vector<8x32xf32>
    %cst = arith.constant dense<0.000000e+00> : vector<8x2304xf32>
    %3 = tpu.matmul %2, %1, %cst {dimension_numbers = #tpu.dot_dimension_numbers<[1], [0], [0], [1], [0, 0, 1, 1], [], []>} : vector<8x32xf32>, vector<32x2304xf32>, vector<8x2304xf32> -> vector<8x2304xf32>
    %c0_4 = arith.constant 0 : index
    %c0_5 = arith.constant 0 : index
    %4 = vector.load %arg4[%c0_4, %c0_5] : memref<8x1xf32, #tpu.memory_space<vmem>>, vector<8x1xf32>
    %5 = vector.broadcast %4 : vector<8x1xf32> to vector<8x2304xf32>
    %6 = arith.addf %3, %5 : vector<8x2304xf32>
    %c0_6 = arith.constant 0 : index
    %c0_7 = arith.constant 0 : index
    %c0_8 = arith.constant 0 : index
    %7 = vector.load %arg5[%c0_6, %c0_7, %c0_8] : memref<1x8x2304xf32, #tpu.memory_space<vmem>>, vector<1x8x2304xf32>
    %8 = vector.shape_cast %7 : vector<1x8x2304xf32> to vector<8x2304xf32>
    %9 = vector.shape_cast %6 : vector<8x2304xf32> to vector<1x8x2304xf32>
    tpu.vector_store %arg5[%c0_6, %c0_7, %c0_8], %9 {strides = array<i32>} : memref<1x8x2304xf32, #tpu.memory_space<vmem>>, vector<1x8x2304xf32>,
    return
  }
  func.func @transform_0(%arg0: i32, %arg1: i32) -> (i32, i32, i32) {
    %c0_i32 = arith.constant 0 : i32
    %c0_i32_0 = arith.constant 0 : i32
    return %arg1, %c0_i32, %arg0 : i32, i32, i32
  }
  func.func @transform_1(%arg0: i32, %arg1: i32) -> (i32, i32) {
    %c0_i32 = arith.constant 0 : i32
    %c0_i32_0 = arith.constant 0 : i32
    %c0_i32_1 = arith.constant 0 : i32
    return %c0_i32, %c0_i32_0 : i32, i32
  }
  func.func @transform_2(%arg0: i32, %arg1: i32) -> (i32, i32) {
    %c0_i32 = arith.constant 0 : i32
    %c0_i32_0 = arith.constant 0 : i32
    %c0_i32_1 = arith.constant 0 : i32
    return %c0_i32, %c0_i32_0 : i32, i32
  }
  func.func @transform_3(%arg0: i32, %arg1: i32) -> (i32, i32, i32) {
    %c0_i32 = arith.constant 0 : i32
    %c0_i32_0 = arith.constant 0 : i32
    return %arg1, %c0_i32, %arg0 : i32, i32, i32
  }
}

module attributes {stable_mosaic.version = 11 : i64} {
  func.func @_attn_fused_kernel(%arg0: i32, %arg1: i32, %arg2: memref<1x32x2304xf32, #tpu.memory_space<vmem>>, %arg3: memref<1x8x36xf32, #tpu.memory_space<vmem>>, %arg4: memref<36x2304xf32, #tpu.memory_space<vmem>>, %arg5: memref<8x32xf32, #tpu.memory_space<vmem>>, %arg6: memref<8x1xf32, #tpu.memory_space<vmem>>, %arg7: memref<8x8xf32, #tpu.memory_space<vmem>>, %arg8: memref<8x1xf32, #tpu.memory_space<vmem>>, %arg9: memref<32x8xf32, #tpu.memory_space<vmem>>, %arg10: memref<32x1xf32, #tpu.memory_space<vmem>>, %arg11: memref<1x32x2304xf32, #tpu.memory_space<vmem>>) attributes {dimension_semantics = [#tpu.dimension_semantics<parallel>, #tpu.dimension_semantics<parallel>], iteration_bounds = array<i64: 1, 2>, scalar_prefetch = 0 : i64, scratch_operands = 0 : i64, tpu.core_type = #tpu.core_type<tc>, window_params = [{transform_indices = @transform_0, window_bounds = array<i64: 1, 32, 2304>}, {transform_indices = @transform_1, window_bounds = array<i64: 1, 8, 36>}, {transform_indices = @transform_2, window_bounds = array<i64: 36, 2304>}, {pipeline_mode = #tpu.pipeline_mode<synchronous>, transform_indices = @transform_3, window_bounds = array<i64: 8, 32>}, {pipeline_mode = #tpu.pipeline_mode<synchronous>, transform_indices = @transform_4, window_bounds = array<i64: 8, 1>}, {pipeline_mode = #tpu.pipeline_mode<synchronous>, transform_indices = @transform_5, window_bounds = array<i64: 8, 8>}, {pipeline_mode = #tpu.pipeline_mode<synchronous>, transform_indices = @transform_6, window_bounds = array<i64: 8, 1>}, {pipeline_mode = #tpu.pipeline_mode<synchronous>, transform_indices = @transform_7, window_bounds = array<i64: 32, 8>}, {pipeline_mode = #tpu.pipeline_mode<synchronous>, transform_indices = @transform_8, window_bounds = array<i64: 32, 1>}, {transform_indices = @transform_9, window_bounds = array<i64: 1, 32, 2304>}]} {
    %c0 = arith.constant 0 : index
    %c0_0 = arith.constant 0 : index
    %c0_1 = arith.constant 0 : index
    %0 = vector.load %arg2[%c0, %c0_0, %c0_1] : memref<1x32x2304xf32, #tpu.memory_space<vmem>>, vector<1x32x2304xf32>
    %1 = vector.shape_cast %0 : vector<1x32x2304xf32> to vector<32x2304xf32>
    %c0_2 = arith.constant 0 : index
    %c0_3 = arith.constant 0 : index
    %2 = vector.load %arg5[%c0_2, %c0_3] : memref<8x32xf32, #tpu.memory_space<vmem>>, vector<8x32xf32>
    %cst = arith.constant dense<0.000000e+00> : vector<8x2304xf32>
    %3 = tpu.matmul %2, %1, %cst {dimension_numbers = #tpu.dot_dimension_numbers<[1], [0], [0], [1], [0, 0, 1, 1], [], []>} : vector<8x32xf32>, vector<32x2304xf32>, vector<8x2304xf32> -> vector<8x2304xf32>
    %c0_4 = arith.constant 0 : index
    %c0_5 = arith.constant 0 : index
    %4 = vector.load %arg6[%c0_4, %c0_5] : memref<8x1xf32, #tpu.memory_space<vmem>>, vector<8x1xf32>
    %5 = vector.broadcast %4 : vector<8x1xf32> to vector<8x2304xf32>
    %6 = arith.addf %3, %5 : vector<8x2304xf32>
    %c0_6 = arith.constant 0 : index
    %c0_7 = arith.constant 0 : index
    %7 = vector.load %arg7[%c0_6, %c0_7] : memref<8x8xf32, #tpu.memory_space<vmem>>, vector<8x8xf32>
    %cst_8 = arith.constant dense<0.000000e+00> : vector<8x2304xf32>
    %8 = tpu.matmul %7, %6, %cst_8 {dimension_numbers = #tpu.dot_dimension_numbers<[1], [0], [0], [1], [0, 0, 1, 1], [], []>} : vector<8x8xf32>, vector<8x2304xf32>, vector<8x2304xf32> -> vector<8x2304xf32>
    %c0_9 = arith.constant 0 : index
    %c0_10 = arith.constant 0 : index
    %9 = vector.load %arg8[%c0_9, %c0_10] : memref<8x1xf32, #tpu.memory_space<vmem>>, vector<8x1xf32>
    %10 = vector.broadcast %9 : vector<8x1xf32> to vector<8x2304xf32>
    %11 = arith.addf %8, %10 : vector<8x2304xf32>
    %c0_11 = arith.constant 0 : index
    %c0_12 = arith.constant 0 : index
    %c0_13 = arith.constant 0 : index
    %12 = vector.load %arg3[%c0_11, %c0_12, %c0_13] : memref<1x8x36xf32, #tpu.memory_space<vmem>>, vector<1x8x36xf32>
    %13 = vector.shape_cast %12 : vector<1x8x36xf32> to vector<8x36xf32>
    %c0_14 = arith.constant 0 : index
    %c0_15 = arith.constant 0 : index
    %14 = vector.load %arg4[%c0_14, %c0_15] : memref<36x2304xf32, #tpu.memory_space<vmem>>, vector<36x2304xf32>
    %cst_16 = arith.constant dense<0.000000e+00> : vector<8x2304xf32>
    %15 = tpu.matmul %13, %14, %cst_16 {dimension_numbers = #tpu.dot_dimension_numbers<[1], [0], [0], [1], [0, 0, 1, 1], [], []>} : vector<8x36xf32>, vector<36x2304xf32>, vector<8x2304xf32> -> vector<8x2304xf32>
    %c0_17 = arith.constant 0 : index
    %c0_18 = arith.constant 0 : index
    %16 = vector.load %arg9[%c0_17, %c0_18] : memref<32x8xf32, #tpu.memory_space<vmem>>, vector<32x8xf32>
    %17 = arith.addf %11, %15 : vector<8x2304xf32>
    %cst_19 = arith.constant dense<0.000000e+00> : vector<32x2304xf32>
    %18 = tpu.matmul %16, %17, %cst_19 {dimension_numbers = #tpu.dot_dimension_numbers<[1], [0], [0], [1], [0, 0, 1, 1], [], []>} : vector<32x8xf32>, vector<8x2304xf32>, vector<32x2304xf32> -> vector<32x2304xf32>
    %c0_20 = arith.constant 0 : index
    %c0_21 = arith.constant 0 : index
    %19 = vector.load %arg10[%c0_20, %c0_21] : memref<32x1xf32, #tpu.memory_space<vmem>>, vector<32x1xf32>
    %20 = vector.broadcast %19 : vector<32x1xf32> to vector<32x2304xf32>
    %21 = arith.addf %18, %20 : vector<32x2304xf32>
    %22 = arith.negf %21 : vector<32x2304xf32>
    %23 = math.exp %22 : vector<32x2304xf32>
    %cst_22 = arith.constant 1.000000e+00 : f32
    %24 = vector.broadcast %cst_22 : f32 to vector<32x2304xf32>
    %25 = arith.addf %24, %23 : vector<32x2304xf32>
    %26 = arith.divf %24, %25 : vector<32x2304xf32>
    %27 = arith.mulf %1, %26 : vector<32x2304xf32>
    %c0_23 = arith.constant 0 : index
    %c0_24 = arith.constant 0 : index
    %c0_25 = arith.constant 0 : index
    %28 = vector.load %arg11[%c0_23, %c0_24, %c0_25] : memref<1x32x2304xf32, #tpu.memory_space<vmem>>, vector<1x32x2304xf32>
    %29 = vector.shape_cast %28 : vector<1x32x2304xf32> to vector<32x2304xf32>
    %30 = vector.shape_cast %27 : vector<32x2304xf32> to vector<1x32x2304xf32>
    tpu.vector_store %arg11[%c0_23, %c0_24, %c0_25], %30 {strides = array<i32>} : memref<1x32x2304xf32, #tpu.memory_space<vmem>>, vector<1x32x2304xf32>,
    return
  }
  func.func @transform_0(%arg0: i32, %arg1: i32) -> (i32, i32, i32) {
    %c0_i32 = arith.constant 0 : i32
    %c0_i32_0 = arith.constant 0 : i32
    return %arg1, %c0_i32, %arg0 : i32, i32, i32
  }
  func.func @transform_1(%arg0: i32, %arg1: i32) -> (i32, i32, i32) {
    %c0_i32 = arith.constant 0 : i32
    %c0_i32_0 = arith.constant 0 : i32
    %c0_i32_1 = arith.constant 0 : i32
    return %arg1, %c0_i32, %c0_i32_0 : i32, i32, i32
  }
  func.func @transform_2(%arg0: i32, %arg1: i32) -> (i32, i32) {
    %c0_i32 = arith.constant 0 : i32
    %c0_i32_0 = arith.constant 0 : i32
    return %c0_i32, %arg0 : i32, i32
  }
  func.func @transform_3(%arg0: i32, %arg1: i32) -> (i32, i32) {
    %c0_i32 = arith.constant 0 : i32
    %c0_i32_0 = arith.constant 0 : i32
    %c0_i32_1 = arith.constant 0 : i32
    return %c0_i32, %c0_i32_0 : i32, i32
  }
  func.func @transform_4(%arg0: i32, %arg1: i32) -> (i32, i32) {
    %c0_i32 = arith.constant 0 : i32
    %c0_i32_0 = arith.constant 0 : i32
    %c0_i32_1 = arith.constant 0 : i32
    return %c0_i32, %c0_i32_0 : i32, i32
  }
  func.func @transform_5(%arg0: i32, %arg1: i32) -> (i32, i32) {
    %c0_i32 = arith.constant 0 : i32
    %c0_i32_0 = arith.constant 0 : i32
    %c0_i32_1 = arith.constant 0 : i32
    return %c0_i32, %c0_i32_0 : i32, i32
  }
  func.func @transform_6(%arg0: i32, %arg1: i32) -> (i32, i32) {
    %c0_i32 = arith.constant 0 : i32
    %c0_i32_0 = arith.constant 0 : i32
    %c0_i32_1 = arith.constant 0 : i32
    return %c0_i32, %c0_i32_0 : i32, i32
  }
  func.func @transform_7(%arg0: i32, %arg1: i32) -> (i32, i32) {
    %c0_i32 = arith.constant 0 : i32
    %c0_i32_0 = arith.constant 0 : i32
    %c0_i32_1 = arith.constant 0 : i32
    return %c0_i32, %c0_i32_0 : i32, i32
  }
  func.func @transform_8(%arg0: i32, %arg1: i32) -> (i32, i32) {
    %c0_i32 = arith.constant 0 : i32
    %c0_i32_0 = arith.constant 0 : i32
    %c0_i32_1 = arith.constant 0 : i32
    return %c0_i32, %c0_i32_0 : i32, i32
  }
  func.func @transform_9(%arg0: i32, %arg1: i32) -> (i32, i32, i32) {
    %c0_i32 = arith.constant 0 : i32
    %c0_i32_0 = arith.constant 0 : i32
    return %arg1, %c0_i32, %arg0 : i32, i32, i32
  }
}

</mosaic_0001>

<bundles_post_ra>
// kernel: esa_forward.2
= control target key start
LH: loop header
LB: loop body
LE: loop exit
PB: predicated region body
PF: predicated region fallthrough
CT: control target
= control target key end

     0   :  { %s1202_s12 = smov 0   ;;  %s1204_s13 = smov 0   ;;  %s1368_s0 = inlined_call_operand.vmem [shape: f32[2,32,2304], index: 0, kind: input, shape index: {}]   ;;  %s1369_s1 = inlined_call_operand.vmem [shape: f32[8,32], index: 1, kind: input, shape index: {}]   ;;  %s1370_s2 = inlined_call_operand.vmem [shape: f32[8,1], index: 2, kind: input, shape index: {}]   ;;  %s1371_s3 = inlined_call_operand.vmem [shape: f32[2,8,2304], index: 3, kind: output, shape index: {}]  }
   0x1   :  { %s1206_s14 = smov 0  }
   0x2 LB: > { %s22_s15 = sadd.s32 1, %s1174_s13  ;;  %p1041_p0 = scmp.ge.s32.totalorder %s1178_s14, 1  ;;  %s1178_s14 = sphi %s1206_s14, %s13_s14   ;;  %s1174_s13 = sphi %s1204_s13, %s1373_s13   ;;  %s1170_s12 = sphi %s1202_s12, %s1372_s12  }
   0x3   : > { %p23_p1 = scmp.ge.s32.totalorder %s22_s15, 2  ;;  %p158_p2 = scmp.lt.s32.totalorder %s1178_s14, 3 }
   0x5   : > { %s1375_s15 = smov (%p23_p1, %s22_s15), 0  ;;  %p159_p3 = pnand %p1041_p0, %p158_p2 }
   0x6   : > { %p191_p4 = scmp.lt.s32.totalorder (!%p159_p3), %s1170_s12, 1  ;;  %v283_v0 = vld [vmem:[%s1370_s2] sm:$0xff] (!%p159_p3)  ;;  %v1180_v1 = vmov (!%p159_p3), 0.0   ;;  %v1181_v2 = vmov (!%p159_p3), 0   ;;  %vm289_vm0 = vcmask (!%p159_p3), 261120  }
   0x7   : > { %162 = sbr.rel (%p159_p3) target bundleno = 277 (0x115), region = 32  ;;  %357 = vmatprep.mubr.f32.mxu0 (!%p159_p3), %v1180_v1  ;;  %428 = vmatprep.mubr.f32.mxu1 (!%p159_p3), %v1180_v1  ;;  %v1257_v32 = vld [vmem:[%s1369_s1] sm:$0xff] (!%p159_p3) }
   0x8   : > { %1155 = vset.pattern.permute.xlu0 (!%p159_p3), %v1181_v2 }
   0x9   : > { %286 = vperm.xlu0 (!%p159_p3), %1155, %v283_v0  }
   0xe   : > { %s1377_s12 = smov (!%p191_p4, %s1170_s12), 1 }
   0xf   : > { %s1127_s18 = smul.u32 576, %s1377_s12 }
  0x10   : > { %s1128_s24 = smul.u32 144, %s1377_s12 }
  0x11   : > { %s1231_s21 = scalar_lea.vmem %s1368_s0, %s1127_s18 }
  0x12   : > { %v211_v3 = vld [vmem:[%s1231_s21 + $0x8] sm:$0xff]  ;;  %v229_v4 = vld [vmem:[%s1231_s21 + $0x98] sm:$0xff]  ;;  %v210_v5 = vld [vmem:[%s1231_s21] sm:$0xff]  ;;  %s1339_s27 = scalar_lea.vmem %s1371_s3, %s1128_s24 }
  0x13   : > { %v1055_v6 = vpack.c.bf16 %v229_v4, %v211_v3  ;;  %v228_v7 = vld [vmem:[%s1231_s21 + $0x90] sm:$0xff]  ;;  %v247_v8 = vld [vmem:[%s1231_s21 + $0x128] sm:$0xff]  ;;  %v265_v9 = vld [vmem:[%s1231_s21 + $0x1b8] sm:$0xff] }
  0x14   : > { %v1057_v10 = vpack.c.bf16 %v228_v7, %v210_v5  ;;  %v1059_v11 = vpack.c.bf16 %v265_v9, %v247_v8  ;;  %v246_v12 = vld [vmem:[%s1231_s21 + $0x120] sm:$0xff]  ;;  %v264_v13 = vld [vmem:[%s1231_s21 + $0x1b0] sm:$0xff]  ;;  %v213_v14 = vld [vmem:[%s1231_s21 + $0x18] sm:$0xff] }
  0x15   : > { %1056 = vmatprep.subr.bf16.mxu0 %v1055_v6  ;;  %v231_v15 = vld [vmem:[%s1231_s21 + $0xa8] sm:$0xff]  ;;  %v212_v16 = vld [vmem:[%s1231_s21 + $0x10] sm:$0xff]  ;;  %v230_v17 = vld [vmem:[%s1231_s21 + $0xa0] sm:$0xff]  ;;  %v1061_v18 = vpack.c.bf16 %v264_v13, %v246_v12 }
  0x16   : > { %1058 = vmatpush1.bf16.msra.mxu0 %v1057_v10  ;;  %v1063_v19 = vpack.c.bf16 %v231_v15, %v213_v14  ;;  %v1065_v20 = vpack.c.bf16 %v230_v17, %v212_v16  ;;  %v215_v21 = vld [vmem:[%s1231_s21 + $0x28] sm:$0xff]  ;;  %v233_v22 = vld [vmem:[%s1231_s21 + $0xb8] sm:$0xff]  ;;  %v214_v23 = vld [vmem:[%s1231_s21 + $0x20] sm:$0xff] }
  0x17   : > { %1060 = vmatprep.subr.bf16.mxu0 %v1059_v11  ;;  %v1071_v24 = vpack.c.bf16 %v233_v22, %v215_v21  ;;  %v232_v25 = vld [vmem:[%s1231_s21 + $0xb0] sm:$0xff]  ;;  %v249_v26 = vld [vmem:[%s1231_s21 + $0x138] sm:$0xff]  ;;  %v267_v27 = vld [vmem:[%s1231_s21 + $0x1c8] sm:$0xff] }
  0x18   : > { %1064 = vmatprep.subr.bf16.mxu1 %v1063_v19  ;;  %v1067_v28 = vpack.c.bf16 %v267_v27, %v249_v26  ;;  %v248_v29 = vld [vmem:[%s1231_s21 + $0x130] sm:$0xff]  ;;  %v266_v30 = vld [vmem:[%s1231_s21 + $0x1c0] sm:$0xff]  ;;  %v251_v31 = vld [vmem:[%s1231_s21 + $0x148] sm:$0xff]  ;;  %v1073_v35 = vpack.c.bf16 %v232_v25, %v214_v23 }
  0x19   : > { %1066 = vmatpush1.bf16.msra.mxu1 %v1065_v20  ;;  %v1069_v33 = vpack.c.bf16 %v266_v30, %v248_v29  ;;  %v269_v34 = vld [vmem:[%s1231_s21 + $0x1d8] sm:$0xff]  ;;  %v235_v37 = vld [vmem:[%s1231_s21 + $0xc8] sm:$0xff]  ;;  %v216_v38 = vld [vmem:[%s1231_s21 + $0x30] sm:$0xff] }
  0x1a   : > { %1062 = vmatpush1.bf16.msra.mxu0 %v1061_v18  ;;  %1068 = vmatprep.subr.bf16.mxu1 %v1067_v28  ;;  %v217_v36 = vld [vmem:[%s1231_s21 + $0x38] sm:$0xff]  ;;  %v1075_v39 = vpack.c.bf16 %v269_v34, %v251_v31  ;;  %v250_v40 = vld [vmem:[%s1231_s21 + $0x140] sm:$0xff]  ;;  %v268_v41 = vld [vmem:[%s1231_s21 + $0x1d0] sm:$0xff] }
  0x1b   : > { %1072 = vmatprep.subr.bf16.mxu0 %v1071_v24  ;;  %v1079_v42 = vpack.c.bf16 %v235_v37, %v217_v36  ;;  %v234_v43 = vld [vmem:[%s1231_s21 + $0xc0] sm:$0xff]  ;;  %v219_v44 = vld [vmem:[%s1231_s21 + $0x48] sm:$0xff]  ;;  %v237_v45 = vld [vmem:[%s1231_s21 + $0xd8] sm:$0xff]  ;;  %v1077_v49 = vpack.c.bf16 %v268_v41, %v250_v40 }
  0x1c   : > { %v253_v46 = vld [vmem:[%s1231_s21 + $0x158] sm:$0xff]  ;;  %v1081_v47 = vpack.c.bf16 %v234_v43, %v216_v38  ;;  %v271_v48 = vld [vmem:[%s1231_s21 + $0x1e8] sm:$0xff]  ;;  %v252_v51 = vld [vmem:[%s1231_s21 + $0x150] sm:$0xff]  ;;  %v1087_v53 = vpack.c.bf16 %v237_v45, %v219_v44 }
  0x1d   : > { %1044 = vmatmul.mubr.msk.f32.vlgmr.msra.gmra.mrb[0].mxu0 %vm289_vm0, %v1257_v32  ;;  %1070 = vmatpush1.bf16.msra.mxu1 %v1069_v33  ;;  %v1083_v50 = vpack.c.bf16 %v271_v48, %v253_v46  ;;  %v270_v52 = vld [vmem:[%s1231_s21 + $0x1e0] sm:$0xff]  ;;  %v236_v55 = vld [vmem:[%s1231_s21 + $0xd0] sm:$0xff]  ;;  %v255_v56 = vld [vmem:[%s1231_s21 + $0x168] sm:$0xff] }
  0x1e   : > { %1074 = vmatpush1.bf16.msra.mxu0 %v1073_v35  ;;  %499 = vmatprep.mubr.f32.mxu0 %v1180_v1  ;;  %v218_v54 = vld [vmem:[%s1231_s21 + $0x40] sm:$0xff]  ;;  %v273_v57 = vld [vmem:[%s1231_s21 + $0x1f8] sm:$0xff]  ;;  %v239_v59 = vld [vmem:[%s1231_s21 + $0xe8] sm:$0xff]  ;;  %v1085_v60 = vpack.c.bf16 %v270_v52, %v252_v51 }
  0x1f   : > { %1076 = vmatprep.subr.bf16.mxu0 %v1075_v39  ;;  %1080 = vmatprep.subr.bf16.mxu1 %v1079_v42  ;;  %v221_v58 = vld [vmem:[%s1231_s21 + $0x58] sm:$0xff]  ;;  %v1089_v61 = vpack.c.bf16 %v236_v55, %v218_v54  ;;  %v254_v62 = vld [vmem:[%s1231_s21 + $0x160] sm:$0xff]  ;;  %v220_v63 = vld [vmem:[%s1231_s21 + $0x50] sm:$0xff]  ;;  %v1091_v2 = vpack.c.bf16 %v273_v57, %v255_v56 }
  0x20   : > { %1045 = vmatmul.mubr.msk.f32.vlgmr.msra.gmra.mrb[0].mxu1 %vm289_vm0, %v1257_v32  ;;  %v238_v0 = vld [vmem:[%s1231_s21 + $0xe0] sm:$0xff]  ;;  %v272_v3 = vld [vmem:[%s1231_s21 + $0x1f0] sm:$0xff]  ;;  %v1095_v4 = vpack.c.bf16 %v239_v59, %v221_v58  ;;  %v257_v5 = vld [vmem:[%s1231_s21 + $0x178] sm:$0xff] }
  0x21   : > { %1082 = vmatpush1.bf16.msra.mxu1 %v1081_v47  ;;  %570 = vmatprep.mubr.f32.mxu1 %v1180_v1  ;;  %v275_v6 = vld [vmem:[%s1231_s21 + $0x208] sm:$0xff]  ;;  %v241_v8 = vld [vmem:[%s1231_s21 + $0xf8] sm:$0xff]  ;;  %v1097_v9 = vpack.c.bf16 %v238_v0, %v220_v63  ;;  %v1093_v10 = vpack.c.bf16 %v272_v3, %v254_v62  ;;  %v256_v12 = vld [vmem:[%s1231_s21 + $0x170] sm:$0xff] }
  0x22   : > { %1078 = vmatpush1.bf16.msra.mxu0 %v1077_v49  ;;  %1084 = vmatprep.subr.bf16.mxu1 %v1083_v50  ;;  %v223_v7 = vld [vmem:[%s1231_s21 + $0x68] sm:$0xff]  ;;  %v1099_v11 = vpack.c.bf16 %v275_v6, %v257_v5  ;;  %v274_v13 = vld [vmem:[%s1231_s21 + $0x200] sm:$0xff]  ;;  %v240_v16 = vld [vmem:[%s1231_s21 + $0xf0] sm:$0xff] }
  0x23   : > { %1088 = vmatprep.subr.bf16.mxu0 %v1087_v53  ;;  %v1103_v14 = vpack.c.bf16 %v241_v8, %v223_v7  ;;  %v222_v15 = vld [vmem:[%s1231_s21 + $0x60] sm:$0xff]  ;;  %v259_v17 = vld [vmem:[%s1231_s21 + $0x188] sm:$0xff]  ;;  %v277_v18 = vld [vmem:[%s1231_s21 + $0x218] sm:$0xff]  ;;  %v1101_v21 = vpack.c.bf16 %v274_v13, %v256_v12 }
  0x24   : > { %v225_v19 = vld [vmem:[%s1231_s21 + $0x78] sm:$0xff]  ;;  %v243_v20 = vld [vmem:[%s1231_s21 + $0x108] sm:$0xff]  ;;  %v1105_v22 = vpack.c.bf16 %v240_v16, %v222_v15  ;;  %v258_v23 = vld [vmem:[%s1231_s21 + $0x180] sm:$0xff]  ;;  %v1107_v26 = vpack.c.bf16 %v277_v18, %v259_v17 }
  0x25   : > { %1046 = vmatmul.mubr.msk.f32.vlgmr.msra.gmra.mrb[2].mxu0 %vm289_vm0, %v1257_v32  ;;  %1086 = vmatpush1.bf16.msra.mxu1 %v1085_v60  ;;  %v224_v24 = vld [vmem:[%s1231_s21 + $0x70] sm:$0xff]  ;;  %v242_v25 = vld [vmem:[%s1231_s21 + $0x100] sm:$0xff]  ;;  %v1111_v28 = vpack.c.bf16 %v243_v20, %v225_v19  ;;  %v261_v29 = vld [vmem:[%s1231_s21 + $0x198] sm:$0xff] }
  0x26   : > { %1090 = vmatpush1.bf16.msra.mxu0 %v1089_v61  ;;  %641 = vmatprep.mubr.f32.mxu0 %v1180_v1  ;;  %v276_v27 = vld [vmem:[%s1231_s21 + $0x210] sm:$0xff]  ;;  %v279_v30 = vld [vmem:[%s1231_s21 + $0x228] sm:$0xff]  ;;  %v245_v33 = vld [vmem:[%s1231_s21 + $0x118] sm:$0xff]  ;;  %v1113_v34 = vpack.c.bf16 %v242_v25, %v224_v24 }
  0x27   : > { %1092 = vmatprep.subr.bf16.mxu0 %v1091_v2  ;;  %1096 = vmatprep.subr.bf16.mxu1 %v1095_v4  ;;  %v227_v31 = vld [vmem:[%s1231_s21 + $0x88] sm:$0xff]  ;;  %v1109_v35 = vpack.c.bf16 %v276_v27, %v258_v23  ;;  %v1115_v36 = vpack.c.bf16 %v279_v30, %v261_v29  ;;  %v260_v37 = vld [vmem:[%s1231_s21 + $0x190] sm:$0xff]  ;;  %v278_v38 = vld [vmem:[%s1231_s21 + $0x220] sm:$0xff] }
  0x28   : > { %1047 = vmatmul.mubr.msk.f32.vlgmr.msra.gmra.mrb[2].mxu1 %vm289_vm0, %v1257_v32  ;;  %v1119_v39 = vpack.c.bf16 %v245_v33, %v227_v31  ;;  %v226_v40 = vld [vmem:[%s1231_s21 + $0x80] sm:$0xff]  ;;  %v244_v41 = vld [vmem:[%s1231_s21 + $0x110] sm:$0xff]  ;;  %v263_v42 = vld [vmem:[%s1231_s21 + $0x1a8] sm:$0xff]  ;;  %v1117_v44 = vpack.c.bf16 %v278_v38, %v260_v37 }
  0x29   : > { %1098 = vmatpush1.bf16.msra.mxu1 %v1097_v9  ;;  %712 = vmatprep.mubr.f32.mxu1 %v1180_v1  ;;  %v281_v43 = vld [vmem:[%s1231_s21 + $0x238] sm:$0xff]  ;;  %v1121_v45 = vpack.c.bf16 %v244_v41, %v226_v40  ;;  %v262_v47 = vld [vmem:[%s1231_s21 + $0x1a0] sm:$0xff]  ;;  %v280_v48 = vld [vmem:[%s1231_s21 + $0x230] sm:$0xff] }
  0x2a   : > { %1094 = vmatpush1.bf16.msra.mxu0 %v1093_v10  ;;  %1100 = vmatprep.subr.bf16.mxu1 %v1099_v11  ;;  %v1123_v46 = vpack.c.bf16 %v281_v43, %v263_v42  ;;  %v1125_v49 = vpack.c.bf16 %v280_v48, %v262_v47 }
  0x2b   : > { %1104 = vmatprep.subr.bf16.mxu0 %v1103_v14 }
  0x2d   : > { %1048 = vmatmul.mubr.msk.f32.vlgmr.msra.gmra.mrb[4].mxu0 %vm289_vm0, %v1257_v32  ;;  %1102 = vmatpush1.bf16.msra.mxu1 %v1101_v21 }
  0x2e   : > { %1106 = vmatpush1.bf16.msra.mxu0 %v1105_v22  ;;  %783 = vmatprep.mubr.f32.mxu0 %v1180_v1 }
  0x2f   : > { %1108 = vmatprep.subr.bf16.mxu0 %v1107_v26  ;;  %1112 = vmatprep.subr.bf16.mxu1 %v1111_v28 }
  0x30   : > { %1049 = vmatmul.mubr.msk.f32.vlgmr.msra.gmra.mrb[4].mxu1 %vm289_vm0, %v1257_v32 }
  0x31   : > { %1114 = vmatpush1.bf16.msra.mxu1 %v1113_v34  ;;  %854 = vmatprep.mubr.f32.mxu1 %v1180_v1 }
  0x32   : > { %1110 = vmatpush1.bf16.msra.mxu0 %v1109_v35  ;;  %1116 = vmatprep.subr.bf16.mxu1 %v1115_v36 }
  0x33   : > { %1120 = vmatprep.subr.bf16.mxu0 %v1119_v39 }
  0x35   : > { %1050 = vmatmul.mubr.msk.f32.vlgmr.msra.gmra.mrb[6].mxu0 %vm289_vm0, %v1257_v32  ;;  %1118 = vmatpush1.bf16.msra.mxu1 %v1117_v44 }
  0x36   : > { %1122 = vmatpush1.bf16.msra.mxu0 %v1121_v45  ;;  %925 = vmatprep.mubr.f32.mxu0 %v1180_v1 }
  0x37   : > { %1124 = vmatprep.subr.bf16.mxu0 %v1123_v46 }
  0x38   : > { %1051 = vmatmul.mubr.msk.f32.vlgmr.msra.gmra.mrb[6].mxu1 %vm289_vm0, %v1257_v32 }
  0x3a   : > { %1126 = vmatpush1.bf16.msra.mxu0 %v1125_v49 }
  0x3d   : > { %1052 = vmatmul.mubr.msk.f32.vlgmr.msra.gmra.mrb[8].mxu0 %vm289_vm0, %v1257_v32 }
  0x88   : > { %v287_v50 = vpop.permute.xlu0 %286 }
  0xf0   : > { %v359_v51 = vpop.f32.mrb[0].mxu0 }
  0xf1   : > { %v360_v1 = vadd.f32 %v359_v51, %v287_v50  ;;  %v361_v52 = vpop.f32.mrb[1].mxu0 }
  0xf2   : > { %v362_v53 = vadd.f32 %v361_v52, %v287_v50 }
  0xf3   : > { %932 = vst [vmem:[%s1339_s27] sm:$0xff] %v360_v1  ;;  %v430_v54 = vpop.f32.mrb[0].mxu1 }
  0xf4   : > { %933 = vst [vmem:[%s1339_s27 + $0x8] sm:$0xff] %v362_v53  ;;  %v431_v32 = vadd.f32 %v430_v54, %v287_v50  ;;  %v432_v55 = vpop.f32.mrb[1].mxu1 }
  0xf5   : > { %v433_v56 = vadd.f32 %v432_v55, %v287_v50 }
  0xf6   : > { %934 = vst [vmem:[%s1339_s27 + $0x10] sm:$0xff] %v431_v32 }
  0xf7   : > { %935 = vst [vmem:[%s1339_s27 + $0x18] sm:$0xff] %v433_v56 }
  0xf8   : > { %v501_v57 = vpop.f32.mrb[2].mxu0 }
  0xf9   : > { %v502_v58 = vadd.f32 %v501_v57, %v287_v50  ;;  %v503_v59 = vpop.f32.mrb[3].mxu0 }
  0xfa   : > { %v504_v60 = vadd.f32 %v503_v59, %v287_v50 }
  0xfb   : > { %936 = vst [vmem:[%s1339_s27 + $0x20] sm:$0xff] %v502_v58  ;;  %v572_v61 = vpop.f32.mrb[2].mxu1 }
  0xfc   : > { %937 = vst [vmem:[%s1339_s27 + $0x28] sm:$0xff] %v504_v60  ;;  %v573_v62 = vadd.f32 %v572_v61, %v287_v50  ;;  %v574_v63 = vpop.f32.mrb[3].mxu1 }
  0xfd   : > { %v575_v0 = vadd.f32 %v574_v63, %v287_v50 }
  0xfe   : > { %938 = vst [vmem:[%s1339_s27 + $0x30] sm:$0xff] %v573_v62 }
  0xff   : > { %939 = vst [vmem:[%s1339_s27 + $0x38] sm:$0xff] %v575_v0 }
 0x100   : > { %v643_v2 = vpop.f32.mrb[4].mxu0 }
 0x101   : > { %v644_v3 = vadd.f32 %v643_v2, %v287_v50  ;;  %v645_v4 = vpop.f32.mrb[5].mxu0 }
 0x102   : > { %v646_v5 = vadd.f32 %v645_v4, %v287_v50 }
 0x103   : > { %940 = vst [vmem:[%s1339_s27 + $0x40] sm:$0xff] %v644_v3  ;;  %v714_v6 = vpop.f32.mrb[4].mxu1 }
 0x104   : > { %941 = vst [vmem:[%s1339_s27 + $0x48] sm:$0xff] %v646_v5  ;;  %v715_v7 = vadd.f32 %v714_v6, %v287_v50  ;;  %v716_v8 = vpop.f32.mrb[5].mxu1 }
 0x105   : > { %v717_v9 = vadd.f32 %v716_v8, %v287_v50 }
 0x106   : > { %942 = vst [vmem:[%s1339_s27 + $0x50] sm:$0xff] %v715_v7 }
 0x107   : > { %943 = vst [vmem:[%s1339_s27 + $0x58] sm:$0xff] %v717_v9 }
 0x108   : > { %v785_v10 = vpop.f32.mrb[6].mxu0 }
 0x109   : > { %v786_v11 = vadd.f32 %v785_v10, %v287_v50  ;;  %v787_v12 = vpop.f32.mrb[7].mxu0 }
 0x10a   : > { %v788_v13 = vadd.f32 %v787_v12, %v287_v50 }
 0x10b   : > { %944 = vst [vmem:[%s1339_s27 + $0x60] sm:$0xff] %v786_v11  ;;  %v856_v14 = vpop.f32.mrb[6].mxu1 }
 0x10c   : > { %945 = vst [vmem:[%s1339_s27 + $0x68] sm:$0xff] %v788_v13  ;;  %v857_v15 = vadd.f32 %v856_v14, %v287_v50  ;;  %v858_v16 = vpop.f32.mrb[7].mxu1 }
 0x10d   : > { %v859_v17 = vadd.f32 %v858_v16, %v287_v50 }
 0x10e   : > { %946 = vst [vmem:[%s1339_s27 + $0x70] sm:$0xff] %v857_v15 }
 0x10f   : > { %947 = vst [vmem:[%s1339_s27 + $0x78] sm:$0xff] %v859_v17 }
 0x110   : > { %v927_v18 = vpop.f32.mrb[8].mxu0 }
 0x111   : > { %v928_v19 = vadd.f32 %v927_v18, %v287_v50  ;;  %v929_v20 = vpop.f32.mrb[9].mxu0 }
 0x112   : > { %v930_v21 = vadd.f32 %v929_v20, %v287_v50 }
 0x113   : > { %948 = vst [vmem:[%s1339_s27 + $0x80] sm:$0xff] %v928_v19 }
 0x114   : > { %949 = vst [vmem:[%s1339_s27 + $0x88] sm:$0xff] %v930_v21 }
 0x115 PF: > { %s13_s14 = sadd.s32 1, %s1178_s14   ;;  %s1372_s12 = smov %s1174_s13 }
 0x116   : > { %p10_p5 = scmp.ge.s32.totalorder %s13_s14, 4   ;;  %s1373_s13 = smov %s1375_s15 }
 0x118   :  { %12 = sbr.rel (!%p10_p5) target bundleno = 2 (0x2), region = 62 }

// kernel: esa_forward.3
= control target key start
LH: loop header
LB: loop body
LE: loop exit
PB: predicated region body
PF: predicated region fallthrough
CT: control target
= control target key end

     0   :  { %s4930_s30 = smov 0   ;;  %s4932_s10 = smov 0   ;;  %s5997_s0 = inlined_call_operand.vmem [shape: f32[2,32,2304], index: 0, kind: input, shape index: {}]   ;;  %s5998_s1 = inlined_call_operand.vmem [shape: f32[2,8,36], index: 1, kind: input, shape index: {}]   ;;  %s5999_s2 = inlined_call_operand.vmem [shape: f32[36,2304], index: 2, kind: input, shape index: {}]   ;;  %s6000_s3 = inlined_call_operand.vmem [shape: f32[8,32], index: 3, kind: input, shape index: {}]   ;;  %s6001_s4 = inlined_call_operand.vmem [shape: f32[8,1], index: 4, kind: input, shape index: {}]   ;;  %s6002_s5 = inlined_call_operand.vmem [shape: f32[8,8], index: 5, kind: input, shape index: {}]   ;;  %s6003_s6 = inlined_call_operand.vmem [shape: f32[8,1], index: 6, kind: input, shape index: {}]   ;;  %s6004_s7 = inlined_call_operand.vmem [shape: f32[32,8], index: 7, kind: input, shape index: {}]   ;;  %s6005_s8 = inlined_call_operand.vmem [shape: f32[32,1], index: 8, kind: input, shape index: {}]   ;;  %s6006_s9 = inlined_call_operand.vmem [shape: f32[2,32,2304], index: 9, kind: output, shape index: {}]  }
   0x1   :  { %s4934_s11 = smov 0  }
   0x2 LB: > { %s28_s12 = sadd.s32 1, %s4872_s10  ;;  %p4126_p0 = scmp.ge.s32.totalorder %s4876_s11, 1  ;;  %s4876_s11 = sphi %s4934_s11, %s19_s11   ;;  %s4872_s10 = sphi %s4932_s10, %s6008_s10   ;;  %s4868_s30 = sphi %s4930_s30, %s6007_s30  }
   0x3   : > { %p29_p1 = scmp.ge.s32.totalorder %s28_s12, 2  ;;  %p328_p2 = scmp.lt.s32.totalorder %s4876_s11, 3 }
   0x5   : > { %s6010_s12 = smov (%p29_p1, %s28_s12), 0  ;;  %p329_p3 = pnand %p4126_p0, %p328_p2 }
   0x6   : > { %p382_p4 = scmp.lt.s32.totalorder (!%p329_p3), %s4868_s30, 1  ;;  %v484_v0 = vld [vmem:[%s6001_s4] sm:$0xff] (!%p329_p3)  ;;  %v4878_v1 = vmov (!%p329_p3), 0.0   ;;  %v4879_v2 = vmov (!%p329_p3), 0   ;;  %v2596_v7 = vld [vmem:[%s6005_s8 + $0x10] sm:$0xff] (!%p329_p3)  ;;  %vm490_vm0 = vcmask (!%p329_p3), 261120  }
   0x7   : > { %332 = sbr.rel (%p329_p3) target bundleno = 881 (0x371), region = 56  ;;  %558 = vmatprep.mubr.f32.mxu0 (!%p329_p3), %v4878_v1  ;;  %629 = vmatprep.mubr.f32.mxu1 (!%p329_p3), %v4878_v1  ;;  %v1134_v3 = vld [vmem:[%s6003_s6] sm:$0xff] (!%p329_p3)  ;;  %vm1140_vm1 = vcmask (!%p329_p3), 64512   ;;  %vm1878_vm2 = vcmask (!%p329_p3), 1043456   ;;  %vm1874_vm3 = vcmask (!%p329_p3), 293888  }
   0x8   : > { %4492 = vset.pattern.permute.xlu0 (!%p329_p3), %v4879_v2  ;;  %4493 = vset.pattern.permute.xlu1 (!%p329_p3), %v4879_v2  ;;  %v4990_v31 = vld [vmem:[%s6000_s3] sm:$0xff] (!%p329_p3) }
   0x9   : > { %487 = vperm.xlu0 (!%p329_p3), %4492, %v484_v0  }
   0xd   : > { %1137 = vperm.xlu0 (!%p329_p3), %4492, %v1134_v3  }
   0xe   : > { %s6012_s30 = smov (!%p382_p4, %s4868_s30), 1 }
   0xf   : > { %s4465_s15 = smul.u32 576, %s6012_s30  ;;  %s4128_s21 = sshll.u32 %s6012_s30, 3 }
  0x10   : > { %s394_s18 = scalar_lea.vmem %s5998_s1, %s4128_s21 }
  0x11   : > { %s4964_s20 = scalar_lea.vmem %s5997_s0, %s4465_s15  ;;  %2610 = vperm.xlu0 %4492, %v2596_v7   ;;  %s5638_s16 = scalar_lea.vmem %s6006_s9, %s4465_s15 }
  0x12   : > { %v412_v4 = vld [vmem:[%s4964_s20 + $0x8] sm:$0xff]  ;;  %v430_v5 = vld [vmem:[%s4964_s20 + $0x98] sm:$0xff]  ;;  %v411_v10 = vld [vmem:[%s4964_s20] sm:$0xff] }
  0x13   : > { %v414_v6 = vld [vmem:[%s4964_s20 + $0x18] sm:$0xff]  ;;  %v4285_v8 = vpack.c.bf16 %v430_v5, %v412_v4  ;;  %v432_v9 = vld [vmem:[%s4964_s20 + $0xa8] sm:$0xff]  ;;  %v429_v11 = vld [vmem:[%s4964_s20 + $0x90] sm:$0xff] }
  0x14   : > { %v4293_v12 = vpack.c.bf16 %v432_v9, %v414_v6  ;;  %v4287_v13 = vpack.c.bf16 %v429_v11, %v411_v10  ;;  %v413_v14 = vld [vmem:[%s4964_s20 + $0x10] sm:$0xff]  ;;  %v431_v15 = vld [vmem:[%s4964_s20 + $0xa0] sm:$0xff]  ;;  %v448_v16 = vld [vmem:[%s4964_s20 + $0x128] sm:$0xff] }
  0x15   : > { %4286 = vmatprep.subr.bf16.mxu0 %v4285_v8  ;;  %v4295_v17 = vpack.c.bf16 %v431_v15, %v413_v14  ;;  %v466_v18 = vld [vmem:[%s4964_s20 + $0x1b8] sm:$0xff]  ;;  %v468_v20 = vld [vmem:[%s4964_s20 + $0x1c8] sm:$0xff]  ;;  %v447_v23 = vld [vmem:[%s4964_s20 + $0x120] sm:$0xff] }
  0x16   : > { %v450_v19 = vld [vmem:[%s4964_s20 + $0x138] sm:$0xff]  ;;  %4294 = vmatprep.subr.bf16.mxu1 %v4293_v12  ;;  %4288 = vmatpush1.bf16.msra.mxu0 %v4287_v13  ;;  %v4289_v21 = vpack.c.bf16 %v466_v18, %v448_v16  ;;  %v465_v24 = vld [vmem:[%s4964_s20 + $0x1b0] sm:$0xff]  ;;  %v467_v27 = vld [vmem:[%s4964_s20 + $0x1c0] sm:$0xff] }
  0x17   : > { %v4297_v22 = vpack.c.bf16 %v468_v20, %v450_v19  ;;  %v449_v25 = vld [vmem:[%s4964_s20 + $0x130] sm:$0xff]  ;;  %4296 = vmatpush1.bf16.msra.mxu1 %v4295_v17  ;;  %v4291_v26 = vpack.c.bf16 %v465_v24, %v447_v23  ;;  %v416_v28 = vld [vmem:[%s4964_s20 + $0x28] sm:$0xff]  ;;  %v434_v29 = vld [vmem:[%s4964_s20 + $0xb8] sm:$0xff] }
  0x18   : > { %4290 = vmatprep.subr.bf16.mxu0 %v4289_v21  ;;  %v4299_v30 = vpack.c.bf16 %v467_v27, %v449_v25  ;;  %v4301_v32 = vpack.c.bf16 %v434_v29, %v416_v28  ;;  %v418_v33 = vld [vmem:[%s4964_s20 + $0x38] sm:$0xff]  ;;  %v436_v34 = vld [vmem:[%s4964_s20 + $0xc8] sm:$0xff]  ;;  %v415_v35 = vld [vmem:[%s4964_s20 + $0x20] sm:$0xff] }
  0x19   : > { %4298 = vmatprep.subr.bf16.mxu1 %v4297_v22  ;;  %v4309_v36 = vpack.c.bf16 %v436_v34, %v418_v33  ;;  %v433_v37 = vld [vmem:[%s4964_s20 + $0xb0] sm:$0xff]  ;;  %v435_v39 = vld [vmem:[%s4964_s20 + $0xc0] sm:$0xff]  ;;  %v452_v41 = vld [vmem:[%s4964_s20 + $0x148] sm:$0xff] }
  0x1a   : > { %v417_v38 = vld [vmem:[%s4964_s20 + $0x30] sm:$0xff]  ;;  %4292 = vmatpush1.bf16.msra.mxu0 %v4291_v26  ;;  %v4303_v40 = vpack.c.bf16 %v433_v37, %v415_v35  ;;  %v470_v42 = vld [vmem:[%s4964_s20 + $0x1d8] sm:$0xff]  ;;  %v472_v46 = vld [vmem:[%s4964_s20 + $0x1e8] sm:$0xff] }
  0x1b   : > { %v454_v43 = vld [vmem:[%s4964_s20 + $0x158] sm:$0xff]  ;;  %4300 = vmatpush1.bf16.msra.mxu1 %v4299_v30  ;;  %4302 = vmatprep.subr.bf16.mxu0 %v4301_v32  ;;  %v4311_v44 = vpack.c.bf16 %v435_v39, %v417_v38  ;;  %v4305_v45 = vpack.c.bf16 %v470_v42, %v452_v41  ;;  %v451_v47 = vld [vmem:[%s4964_s20 + $0x140] sm:$0xff]  ;;  %v469_v48 = vld [vmem:[%s4964_s20 + $0x1d0] sm:$0xff] }
  0x1c   : > { %4310 = vmatprep.subr.bf16.mxu1 %v4309_v36  ;;  %v4313_v49 = vpack.c.bf16 %v472_v46, %v454_v43  ;;  %v453_v50 = vld [vmem:[%s4964_s20 + $0x150] sm:$0xff]  ;;  %v471_v51 = vld [vmem:[%s4964_s20 + $0x1e0] sm:$0xff]  ;;  %v420_v52 = vld [vmem:[%s4964_s20 + $0x48] sm:$0xff]  ;;  %v4307_v56 = vpack.c.bf16 %v469_v48, %v451_v47 }
  0x1d   : > { %4130 = vmatmul.mubr.msk.f32.vlgmr.msra.gmra.mrb[0].mxu0 %vm490_vm0, %v4990_v31  ;;  %v438_v53 = vld [vmem:[%s4964_s20 + $0xd8] sm:$0xff]  ;;  %v440_v55 = vld [vmem:[%s4964_s20 + $0xe8] sm:$0xff]  ;;  %v4315_v57 = vpack.c.bf16 %v471_v51, %v453_v50  ;;  %v419_v59 = vld [vmem:[%s4964_s20 + $0x40] sm:$0xff] }
  0x1e   : > { %v422_v54 = vld [vmem:[%s4964_s20 + $0x58] sm:$0xff]  ;;  %4131 = vmatmul.mubr.msk.f32.vlgmr.msra.gmra.mrb[0].mxu1 %vm490_vm0, %v4990_v31  ;;  %4304 = vmatpush1.bf16.msra.mxu0 %v4303_v40  ;;  %v4317_v58 = vpack.c.bf16 %v438_v53, %v420_v52  ;;  %v437_v60 = vld [vmem:[%s4964_s20 + $0xd0] sm:$0xff]  ;;  %v439_v63 = vld [vmem:[%s4964_s20 + $0xe0] sm:$0xff] }
  0x1f   : > { %4312 = vmatpush1.bf16.msra.mxu1 %v4311_v44  ;;  %4306 = vmatprep.subr.bf16.mxu0 %v4305_v45  ;;  %v421_v61 = vld [vmem:[%s4964_s20 + $0x50] sm:$0xff]  ;;  %v4325_v62 = vpack.c.bf16 %v440_v55, %v422_v54  ;;  %v456_v0 = vld [vmem:[%s4964_s20 + $0x168] sm:$0xff]  ;;  %v474_v2 = vld [vmem:[%s4964_s20 + $0x1f8] sm:$0xff]  ;;  %v4319_v5 = vpack.c.bf16 %v437_v60, %v419_v59 }
  0x20   : > { %4314 = vmatprep.subr.bf16.mxu1 %v4313_v49  ;;  %700 = vmatprep.mubr.f32.mxu0 %v4878_v1  ;;  %v458_v3 = vld [vmem:[%s4964_s20 + $0x178] sm:$0xff]  ;;  %v476_v4 = vld [vmem:[%s4964_s20 + $0x208] sm:$0xff]  ;;  %v4327_v6 = vpack.c.bf16 %v439_v63, %v421_v61  ;;  %v4321_v7 = vpack.c.bf16 %v474_v2, %v456_v0  ;;  %v455_v8 = vld [vmem:[%s4964_s20 + $0x160] sm:$0xff] }
  0x21   : > { %771 = vmatprep.mubr.f32.mxu1 %v4878_v1  ;;  %v473_v9 = vld [vmem:[%s4964_s20 + $0x1f0] sm:$0xff]  ;;  %v4329_v11 = vpack.c.bf16 %v476_v4, %v458_v3  ;;  %v475_v12 = vld [vmem:[%s4964_s20 + $0x200] sm:$0xff]  ;;  %v424_v13 = vld [vmem:[%s4964_s20 + $0x68] sm:$0xff] }
  0x22   : > { %4308 = vmatpush1.bf16.msra.mxu0 %v4307_v56  ;;  %v457_v10 = vld [vmem:[%s4964_s20 + $0x170] sm:$0xff]  ;;  %v442_v14 = vld [vmem:[%s4964_s20 + $0xf8] sm:$0xff]  ;;  %v444_v16 = vld [vmem:[%s4964_s20 + $0x108] sm:$0xff]  ;;  %v4323_v17 = vpack.c.bf16 %v473_v9, %v455_v8 }
  0x23   : > { %4316 = vmatpush1.bf16.msra.mxu1 %v4315_v57  ;;  %4318 = vmatprep.subr.bf16.mxu0 %v4317_v58  ;;  %v426_v15 = vld [vmem:[%s4964_s20 + $0x78] sm:$0xff]  ;;  %v4331_v18 = vpack.c.bf16 %v475_v12, %v457_v10  ;;  %v4333_v19 = vpack.c.bf16 %v442_v14, %v424_v13  ;;  %v423_v20 = vld [vmem:[%s4964_s20 + $0x60] sm:$0xff]  ;;  %v441_v21 = vld [vmem:[%s4964_s20 + $0xf0] sm:$0xff] }
  0x24   : > { %4326 = vmatprep.subr.bf16.mxu1 %v4325_v62  ;;  %v425_v22 = vld [vmem:[%s4964_s20 + $0x70] sm:$0xff]  ;;  %v4341_v23 = vpack.c.bf16 %v444_v16, %v426_v15  ;;  %v443_v24 = vld [vmem:[%s4964_s20 + $0x100] sm:$0xff]  ;;  %v460_v25 = vld [vmem:[%s4964_s20 + $0x188] sm:$0xff]  ;;  %v4335_v29 = vpack.c.bf16 %v441_v21, %v423_v20 }
  0x25   : > { %4132 = vmatmul.mubr.msk.f32.vlgmr.msra.gmra.mrb[2].mxu0 %vm490_vm0, %v4990_v31  ;;  %v478_v26 = vld [vmem:[%s4964_s20 + $0x218] sm:$0xff]  ;;  %v480_v28 = vld [vmem:[%s4964_s20 + $0x228] sm:$0xff]  ;;  %v4343_v30 = vpack.c.bf16 %v443_v24, %v425_v22  ;;  %v459_v33 = vld [vmem:[%s4964_s20 + $0x180] sm:$0xff] }
  0x26   : > { %4133 = vmatmul.mubr.msk.f32.vlgmr.msra.gmra.mrb[2].mxu1 %vm490_vm0, %v4990_v31  ;;  %4320 = vmatpush1.bf16.msra.mxu0 %v4319_v5  ;;  %v462_v27 = vld [vmem:[%s4964_s20 + $0x198] sm:$0xff]  ;;  %v4337_v32 = vpack.c.bf16 %v478_v26, %v460_v25  ;;  %v477_v34 = vld [vmem:[%s4964_s20 + $0x210] sm:$0xff]  ;;  %v479_v37 = vld [vmem:[%s4964_s20 + $0x220] sm:$0xff] }
  0x27   : > { %4328 = vmatpush1.bf16.msra.mxu1 %v4327_v6  ;;  %4322 = vmatprep.subr.bf16.mxu0 %v4321_v7  ;;  %v461_v35 = vld [vmem:[%s4964_s20 + $0x190] sm:$0xff]  ;;  %v4345_v36 = vpack.c.bf16 %v480_v28, %v462_v27  ;;  %v428_v38 = vld [vmem:[%s4964_s20 + $0x88] sm:$0xff]  ;;  %v446_v39 = vld [vmem:[%s4964_s20 + $0x118] sm:$0xff]  ;;  %v4339_v40 = vpack.c.bf16 %v477_v34, %v459_v33 }
  0x28   : > { %4330 = vmatprep.subr.bf16.mxu1 %v4329_v11  ;;  %842 = vmatprep.mubr.f32.mxu0 %v4878_v1  ;;  %v4347_v41 = vpack.c.bf16 %v479_v37, %v461_v35  ;;  %v4349_v42 = vpack.c.bf16 %v446_v39, %v428_v38  ;;  %v427_v43 = vld [vmem:[%s4964_s20 + $0x80] sm:$0xff]  ;;  %v445_v44 = vld [vmem:[%s4964_s20 + $0x110] sm:$0xff]  ;;  %v464_v45 = vld [vmem:[%s4964_s20 + $0x1a8] sm:$0xff] }
  0x29   : > { %913 = vmatprep.mubr.f32.mxu1 %v4878_v1  ;;  %v482_v46 = vld [vmem:[%s4964_s20 + $0x238] sm:$0xff]  ;;  %v4351_v47 = vpack.c.bf16 %v445_v44, %v427_v43  ;;  %v463_v49 = vld [vmem:[%s4964_s20 + $0x1a0] sm:$0xff]  ;;  %v481_v50 = vld [vmem:[%s4964_s20 + $0x230] sm:$0xff] }
  0x2a   : > { %4324 = vmatpush1.bf16.msra.mxu0 %v4323_v17  ;;  %v4353_v48 = vpack.c.bf16 %v482_v46, %v464_v45  ;;  %v4355_v51 = vpack.c.bf16 %v481_v50, %v463_v49  ;;  %v5080_v59 = vld [vmem:[%s6002_s5] sm:$0xff]  ;;  %v1785_v15 = vld [vmem:[%s5999_s2 + $0x8] sm:$0xff]  ;;  %v1803_v16 = vld [vmem:[%s5999_s2 + $0x98] sm:$0xff] }
  0x2b   : > { %4332 = vmatpush1.bf16.msra.mxu1 %v4331_v18  ;;  %4334 = vmatprep.subr.bf16.mxu0 %v4333_v19  ;;  %v1784_v19 = vld [vmem:[%s5999_s2] sm:$0xff]  ;;  %v1802_v20 = vld [vmem:[%s5999_s2 + $0x90] sm:$0xff]  ;;  %v1839_v24 = vld [vmem:[%s5999_s2 + $0x1b8] sm:$0xff]  ;;  %v4357_v27 = vpack.c.bf16 %v1803_v16, %v1785_v15 }
  0x2c   : > { %4342 = vmatprep.subr.bf16.mxu1 %v4341_v23  ;;  %v1821_v23 = vld [vmem:[%s5999_s2 + $0x128] sm:$0xff]  ;;  %v1838_v33 = vld [vmem:[%s5999_s2 + $0x1b0] sm:$0xff]  ;;  %v1807_v35 = vld [vmem:[%s5999_s2 + $0xb8] sm:$0xff] }
  0x2d   : > { %4134 = vmatmul.mubr.msk.f32.vlgmr.msra.gmra.mrb[4].mxu0 %vm490_vm0, %v4990_v31  ;;  %v1789_v34 = vld [vmem:[%s5999_s2 + $0x28] sm:$0xff]  ;;  %v1788_v38 = vld [vmem:[%s5999_s2 + $0x20] sm:$0xff]  ;;  %v1806_v39 = vld [vmem:[%s5999_s2 + $0xb0] sm:$0xff] }
  0x2e   : > { %4135 = vmatmul.mubr.msk.f32.vlgmr.msra.gmra.mrb[4].mxu1 %vm490_vm0, %v4990_v31  ;;  %4336 = vmatpush1.bf16.msra.mxu0 %v4335_v29  ;;  %v4359_v29 = vpack.c.bf16 %v1802_v20, %v1784_v19  ;;  %v1857_v44 = vld [vmem:[%s5999_s2 + $0x248] sm:$0xf]  ;;  %v4373_v45 = vpack.c.bf16 %v1807_v35, %v1789_v34  ;;  %v1787_v46 = vld [vmem:[%s5999_s2 + $0x18] sm:$0xff]  ;;  %v4375_v49 = vpack.c.bf16 %v1806_v39, %v1788_v38  ;;  %v1786_v50 = vld [vmem:[%s5999_s2 + $0x10] sm:$0xff] }
  0x2f   : > { %4344 = vmatpush1.bf16.msra.mxu1 %v4343_v30  ;;  %4338 = vmatprep.subr.bf16.mxu0 %v4337_v32  ;;  %v4361_v30 = vpack.c.bf16 %v1839_v24, %v1821_v23  ;;  %v1820_v32 = vld [vmem:[%s5999_s2 + $0x120] sm:$0xff]  ;;  %v1790_v15 = vld [vmem:[%s5999_s2 + $0x30] sm:$0xff]  ;;  %v1827_v20 = vld [vmem:[%s5999_s2 + $0x158] sm:$0xff] }
  0x30   : > { %4346 = vmatprep.subr.bf16.mxu1 %v4345_v36  ;;  %984 = vmatprep.mubr.f32.mxu0 %v4878_v1  ;;  %v4363_v37 = vpack.c.bf16 %v1838_v33, %v1820_v32  ;;  %v1808_v16 = vld [vmem:[%s5999_s2 + $0xc0] sm:$0xff]  ;;  %v1846_v19 = vld [vmem:[%s5999_s2 + $0x1f0] sm:$0xff]  ;;  %v1815_v32 = vld [vmem:[%s5999_s2 + $0xf8] sm:$0xff] }
  0x31   : > { %1055 = vmatprep.mubr.f32.mxu1 %v4878_v1  ;;  %v4383_v24 = vpack.c.bf16 %v1808_v16, %v1790_v15  ;;  %v1796_v34 = vld [vmem:[%s5999_s2 + $0x60] sm:$0xff]  ;;  %v1814_v35 = vld [vmem:[%s5999_s2 + $0xf0] sm:$0xff]  ;;  %v1851_v38 = vld [vmem:[%s5999_s2 + $0x218] sm:$0xff] }
  0x32   : > { %4340 = vmatpush1.bf16.msra.mxu0 %v4339_v40  ;;  %v1863_v39 = vld [vmem:[%s5999_s2 + $0x278] sm:$0xf]  ;;  %v1853_v15 = vld [vmem:[%s5999_s2 + $0x228] sm:$0xff]  ;;  %v1866_v16 = vld [vmem:[%s5999_s2 + $0x290] sm:$0xf] }
  0x33   : > { %4348 = vmatpush1.bf16.msra.mxu1 %v4347_v41  ;;  %4350 = vmatprep.subr.bf16.mxu0 %v4349_v42  ;;  %v1825_v41 = vld [vmem:[%s5999_s2 + $0x148] sm:$0xff]  ;;  %v1843_v42 = vld [vmem:[%s5999_s2 + $0x1d8] sm:$0xff] }
  0x35   : > { %4136 = vmatmul.mubr.msk.f32.vlgmr.msra.gmra.mrb[6].mxu0 %vm490_vm0, %v4990_v31 }
  0x36   : > { %4137 = vmatmul.mubr.msk.f32.vlgmr.msra.gmra.mrb[6].mxu1 %vm490_vm0, %v4990_v31  ;;  %4352 = vmatpush1.bf16.msra.mxu0 %v4351_v47  ;;  %v1805_v47 = vld [vmem:[%s5999_s2 + $0xa8] sm:$0xff] }
  0x37   : > { %4354 = vmatprep.subr.bf16.mxu0 %v4353_v48  ;;  %1126 = vmatprep.mubr.f32.mxu0 %v4878_v1 }
  0x38   : > { %1208 = vmatprep.mubr.f32.mxu1 %v4878_v1 }
  0x3a   : > { %4356 = vmatpush1.bf16.msra.mxu0 %v4355_v51  ;;  %v1804_v51 = vld [vmem:[%s5999_s2 + $0xa0] sm:$0xff] }
  0x3d   : > { %4138 = vmatmul.mubr.msk.f32.vlgmr.msra.gmra.mrb[8].mxu0 %vm490_vm0, %v4990_v31 }
  0x3e   : > { %1492 = vmatprep.mubr.f32.mxu0 %v4878_v1 }
  0x88   : > { %v5073_v53 = vpop.permute.xlu0 %487 }
  0xf0   : > { %v560_v52 = vpop.f32.mrb[0].mxu0 }
  0xf1   : > { %v562_v54 = vpop.f32.mrb[1].mxu0  ;;  %v631_v55 = vpop.f32.mrb[0].mxu1  ;;  %v561_v56 = vadd.f32 %v560_v52, %v5073_v53  ;;  %v1824_v52 = vld [vmem:[%s5999_s2 + $0x140] sm:$0xff] }
  0xf2   : > { %v563_v57 = vadd.f32 %v562_v54, %v5073_v53  ;;  %v633_v58 = vpop.f32.mrb[1].mxu1  ;;  %v632_v60 = vadd.f32 %v631_v55, %v5073_v53  ;;  %v1842_v54 = vld [vmem:[%s5999_s2 + $0x1d0] sm:$0xff]  ;;  %v1823_v55 = vld [vmem:[%s5999_s2 + $0x138] sm:$0xff] }
  0xf3   : > { %v634_v31 = vadd.f32 %v633_v58, %v5073_v53  ;;  %v4365_v58 = vpack.c.bf16 %v1805_v47, %v1787_v46  ;;  %v1832_v46 = vld [vmem:[%s5999_s2 + $0x180] sm:$0xff] }
  0xf4   : > { %1144 = vmatprep.subr.mxu1 %v563_v57  ;;  %v1856_v57 = vld [vmem:[%s5999_s2 + $0x240] sm:$0xf] }
  0xf5   : > { %1145 = vmatpush1.msra.mxu1 %v561_v56  ;;  %v1841_v56 = vld [vmem:[%s5999_s2 + $0x1c8] sm:$0xff] }
  0xf6   : > { %4139 = vmatmul.mubr.msk.f32.vlgmr.msra.gmra.mrb[8].mxu1 %vm1140_vm1, %v5080_v59  ;;  %1215 = vmatprep.subr.mxu1 %v634_v31  ;;  %v5201_v31 = vld [vmem:[%s394_s18] sm:$0xff] }
  0xf7   : > { %1216 = vmatpush1.msra.mxu1 %v632_v60  ;;  %1279 = vmatprep.mubr.f32.mxu1 %v4878_v1  ;;  %v4367_v60 = vpack.c.bf16 %v1804_v51, %v1786_v50  ;;  %v1849_v50 = vld [vmem:[%s5999_s2 + $0x208] sm:$0xff]  ;;  %v1862_v51 = vld [vmem:[%s5999_s2 + $0x270] sm:$0xf] }
  0xf8   : > { %v702_v61 = vpop.f32.mrb[2].mxu0 }
  0xf9   : > { %v704_v62 = vpop.f32.mrb[3].mxu0  ;;  %v773_v63 = vpop.f32.mrb[2].mxu1  ;;  %v703_v3 = vadd.f32 %v702_v61, %v5073_v53  ;;  %v4379_v61 = vpack.c.bf16 %v1842_v54, %v1824_v52 }
  0xfa   : > { %v705_v0 = vadd.f32 %v704_v62, %v5073_v53  ;;  %v775_v2 = vpop.f32.mrb[3].mxu1  ;;  %4140 = vmatmul.mubr.msk.f32.vlgmr.msra.gmra.mrb[10].mxu1 %vm1140_vm1, %v5080_v59  ;;  %v774_v5 = vadd.f32 %v773_v63, %v5073_v53  ;;  %v4369_v62 = vpack.c.bf16 %v1841_v56, %v1823_v55  ;;  %v1822_v63 = vld [vmem:[%s5999_s2 + $0x130] sm:$0xff] }
  0xfb   : > { %1350 = vmatprep.mubr.f32.mxu1 %v4878_v1  ;;  %v776_v4 = vadd.f32 %v775_v2, %v5073_v53  ;;  %v1793_v2 = vld [vmem:[%s5999_s2 + $0x48] sm:$0xff]  ;;  %v1830_v56 = vld [vmem:[%s5999_s2 + $0x170] sm:$0xff] }
  0xfc   : > { %1286 = vmatprep.subr.mxu1 %v705_v0  ;;  %v1840_v0 = vld [vmem:[%s5999_s2 + $0x1c0] sm:$0xff] }
  0xfd   : > { %1287 = vmatpush1.msra.mxu1 %v703_v3  ;;  %v1811_v3 = vld [vmem:[%s5999_s2 + $0xd8] sm:$0xff] }
  0xfe   : > { %4141 = vmatmul.mubr.msk.f32.vlgmr.msra.gmra.mrb[12].mxu1 %vm1140_vm1, %v5080_v59  ;;  %1357 = vmatprep.subr.mxu1 %v776_v4  ;;  %v4371_v4 = vpack.c.bf16 %v1840_v0, %v1822_v63  ;;  %v1800_v63 = vld [vmem:[%s5999_s2 + $0x80] sm:$0xff]  ;;  %v1818_v0 = vld [vmem:[%s5999_s2 + $0x110] sm:$0xff] }
  0xff   : > { %1358 = vmatpush1.msra.mxu1 %v774_v5  ;;  %1421 = vmatprep.mubr.f32.mxu1 %v4878_v1  ;;  %v1792_v5 = vld [vmem:[%s5999_s2 + $0x40] sm:$0xff] }
 0x100   : > { %v844_v6 = vpop.f32.mrb[4].mxu0 }
 0x101   : > { %v915_v7 = vpop.f32.mrb[4].mxu1  ;;  %v846_v8 = vpop.f32.mrb[5].mxu0  ;;  %v845_v11 = vadd.f32 %v844_v6, %v5073_v53  ;;  %v1810_v6 = vld [vmem:[%s5999_s2 + $0xd0] sm:$0xff] }
 0x102   : > { %v847_v9 = vadd.f32 %v846_v8, %v5073_v53  ;;  %v917_v10 = vpop.f32.mrb[5].mxu1  ;;  %4142 = vmatmul.mubr.msk.f32.vlgmr.msra.gmra.mrb[14].mxu1 %vm1140_vm1, %v5080_v59  ;;  %v916_v13 = vadd.f32 %v915_v7, %v5073_v53  ;;  %v1860_v7 = vld [vmem:[%s5999_s2 + $0x260] sm:$0xf]  ;;  %v1829_v8 = vld [vmem:[%s5999_s2 + $0x168] sm:$0xff] }
 0x103   : > { %v918_v12 = vadd.f32 %v917_v10, %v5073_v53  ;;  %1563 = vmatprep.mubr.f32.mxu1 %v4878_v1  ;;  %v1859_v10 = vld [vmem:[%s5999_s2 + $0x258] sm:$0xf] }
 0x104   : > { %1428 = vmatprep.subr.mxu0 %v847_v9  ;;  %v1847_v9 = vld [vmem:[%s5999_s2 + $0x1f8] sm:$0xff] }
 0x105   : > { %1499 = vmatprep.subr.mxu1 %v918_v12  ;;  %1429 = vmatpush1.msra.mxu0 %v845_v11  ;;  %v4389_v11 = vpack.c.bf16 %v1811_v3, %v1793_v2  ;;  %v1791_v12 = vld [vmem:[%s5999_s2 + $0x38] sm:$0xff]  ;;  %v1837_v2 = vld [vmem:[%s5999_s2 + $0x1a8] sm:$0xff] }
 0x106   : > { %1500 = vmatpush1.msra.mxu1 %v916_v13  ;;  %4143 = vmatmul.mubr.msk.f32.vlgmr.msra.gmra.mrb[10].mxu0 %vm1140_vm1, %v5080_v59  ;;  %v1809_v13 = vld [vmem:[%s5999_s2 + $0xc8] sm:$0xff]  ;;  %v1855_v3 = vld [vmem:[%s5999_s2 + $0x238] sm:$0xff] }
 0x107   : > { %4144 = vmatmul.mubr.msk.f32.vlgmr.msra.gmra.mrb[16].mxu1 %vm1140_vm1, %v5080_v59  ;;  %1634 = vmatprep.mubr.f32.mxu0 %v4878_v1  ;;  %v4381_v23 = vpack.c.bf16 %v1809_v13, %v1791_v12  ;;  %v4425_v12 = vpack.c.bf16 %v1855_v3, %v1837_v2  ;;  %v1854_v13 = vld [vmem:[%s5999_s2 + $0x230] sm:$0xff] }
 0x108   : > { %v986_v14 = vpop.f32.mrb[6].mxu0  ;;  %1705 = vmatprep.mubr.f32.mxu1 %v4878_v1 }
 0x109   : > { %v1057_v17 = vpop.f32.mrb[6].mxu1  ;;  %v988_v18 = vpop.f32.mrb[7].mxu0  ;;  %v987_v25 = vadd.f32 %v986_v14, %v5073_v53  ;;  %v4391_v14 = vpack.c.bf16 %v1810_v6, %v1792_v5  ;;  %v1799_v6 = vld [vmem:[%s5999_s2 + $0x78] sm:$0xff] }
 0x10a   : > { %v989_v21 = vadd.f32 %v988_v18, %v5073_v53  ;;  %v1059_v22 = vpop.f32.mrb[7].mxu1  ;;  %v1058_v28 = vadd.f32 %v1057_v17, %v5073_v53  ;;  %v1828_v17 = vld [vmem:[%s5999_s2 + $0x160] sm:$0xff]  ;;  %v4393_v18 = vpack.c.bf16 %v1847_v9, %v1829_v8  ;;  %v4423_v8 = vpack.c.bf16 %v1818_v0, %v1800_v63  ;;  %v1798_v9 = vld [vmem:[%s5999_s2 + $0x70] sm:$0xff] }
 0x10b   : > { %v1060_v26 = vadd.f32 %v1059_v22, %v5073_v53  ;;  %v1858_v22 = vld [vmem:[%s5999_s2 + $0x250] sm:$0xf] }
 0x10c   : > { %1570 = vmatprep.subr.mxu0 %v989_v21  ;;  %v1845_v21 = vld [vmem:[%s5999_s2 + $0x1e8] sm:$0xff] }
 0x10d   : > { %1641 = vmatprep.subr.mxu1 %v1060_v26  ;;  %1571 = vmatpush1.msra.mxu0 %v987_v25  ;;  %v4395_v25 = vpack.c.bf16 %v1846_v19, %v1828_v17  ;;  %v4385_v26 = vpack.c.bf16 %v1845_v21, %v1827_v20  ;;  %v1834_v21 = vld [vmem:[%s5999_s2 + $0x190] sm:$0xff] }
 0x10e   : > { %1642 = vmatpush1.msra.mxu1 %v1058_v28  ;;  %4145 = vmatmul.mubr.msk.f32.vlgmr.msra.gmra.mrb[12].mxu0 %vm1140_vm1, %v5080_v59  ;;  %v1844_v28 = vld [vmem:[%s5999_s2 + $0x1e0] sm:$0xff] }
 0x10f   : > { %4358 = vmatprep.subr.bf16.mxu1 %v4357_v27  ;;  %4146 = vmatmul.mubr.msk.f32.vlgmr.msra.gmra.mrb[18].mxu1 %vm1140_vm1, %v5080_v59  ;;  %v1826_v27 = vld [vmem:[%s5999_s2 + $0x150] sm:$0xff] }
 0x110   : > { %4360 = vmatpush1.bf16.msra.mxu1 %v4359_v29  ;;  %v1128_v36 = vpop.f32.mrb[8].mxu0  ;;  %1776 = vmatprep.mubr.f32.mxu0 %v4878_v1  ;;  %v1865_v29 = vld [vmem:[%s5999_s2 + $0x288] sm:$0xf]  ;;  %v4387_v33 = vpack.c.bf16 %v1844_v28, %v1826_v27  ;;  %v1870_v27 = vld [vmem:[%s5999_s2 + $0x2b0] sm:$0xf]  ;;  %v2594_v28 = vld [vmem:[%s6005_s8] sm:$0xff] }
 0x111   : > { %v1130_v40 = vpop.f32.mrb[9].mxu0  ;;  %4362 = vmatprep.subr.bf16.mxu1 %v4361_v30  ;;  %1997 = vmatprep.mubr.f32.mxu1 %v4878_v1  ;;  %v1129_v48 = vadd.f32 %v1128_v36, %v5073_v53  ;;  %v1797_v30 = vld [vmem:[%s5999_s2 + $0x68] sm:$0xff]  ;;  %v1864_v36 = vld [vmem:[%s5999_s2 + $0x280] sm:$0xf] }
 0x112   : > { %v1131_v43 = vadd.f32 %v1130_v40, %v5073_v53  ;;  %v4377_v53 = vpack.c.bf16 %v1843_v42, %v1825_v41  ;;  %v4405_v40 = vpack.c.bf16 %v1815_v32, %v1797_v30  ;;  %v1795_v41 = vld [vmem:[%s5999_s2 + $0x58] sm:$0xff]  ;;  %v1813_v42 = vld [vmem:[%s5999_s2 + $0xe8] sm:$0xff]  ;;  %2600 = vperm.xlu1 %4493, %v2594_v28  }
 0x113   : > { %v4397_v52 = vpack.c.bf16 %v1813_v42, %v1795_v41  ;;  %v2597_v30 = vld [vmem:[%s6005_s8 + $0x18] sm:$0xff]  ;;  %v5472_v42 = vld [vmem:[%s6004_s7 + $0x8] sm:$0xff] }
 0x114   : > { %4364 = vmatpush1.bf16.msra.mxu1 %v4363_v37  ;;  %1712 = vmatprep.subr.mxu0 %v1131_v43  ;;  %v1833_v37 = vld [vmem:[%s5999_s2 + $0x188] sm:$0xff]  ;;  %v4407_v43 = vpack.c.bf16 %v1814_v35, %v1796_v34  ;;  %v5455_v34 = vpop.permute.xlu0 %1137 }
 0x115   : > { %1713 = vmatpush1.msra.mxu0 %v1129_v48  ;;  %4148 = vmatprep.subr.msk.mxu1 %vm1878_vm2, %v1857_v44  ;;  %v1794_v44 = vld [vmem:[%s5999_s2 + $0x50] sm:$0xff]  ;;  %v4409_v47 = vpack.c.bf16 %v1851_v38, %v1833_v37  ;;  %v5462_v38 = vld [vmem:[%s6004_s7] sm:$0xff] }
 0x116   : > { %4374 = vmatprep.subr.bf16.mxu0 %v4373_v45  ;;  %4147 = vmatmul.mubr.msk.f32.vlgmr.msra.gmra.mrb[14].mxu0 %vm1140_vm1, %v5080_v59  ;;  %v1861_v59 = vld [vmem:[%s5999_s2 + $0x268] sm:$0xf]  ;;  %v1812_v45 = vld [vmem:[%s5999_s2 + $0xe0] sm:$0xff]  ;;  %v1850_v48 = vld [vmem:[%s5999_s2 + $0x210] sm:$0xff] }
 0x117   : > { %4376 = vmatpush1.bf16.msra.mxu0 %v4375_v49  ;;  %2139 = vmatprep.mubr.f32.mxu0 %v4878_v1  ;;  %v1831_v49 = vld [vmem:[%s5999_s2 + $0x178] sm:$0xff]  ;;  %v4411_v54 = vpack.c.bf16 %v1850_v48, %v1832_v46  ;;  %v5480_v48 = vld [vmem:[%s6004_s7 + $0x10] sm:$0xff] }
 0x118   : > { %4149 = vmatpush1.msk.msra.mxu1 %vm1878_vm2, %v1856_v57  ;;  %4378 = vmatprep.subr.bf16.mxu0 %v4377_v53  ;;  %v4399_v53 = vpack.c.bf16 %v1812_v45, %v1794_v44  ;;  %v4401_v55 = vpack.c.bf16 %v1849_v50, %v1831_v49  ;;  %v1848_v57 = vld [vmem:[%s5999_s2 + $0x200] sm:$0xff] }
 0x119   : > { %4150 = vmatmul.mubr.msk.f32.vlgmr.msra.gmra.mrb[8].mxu1 %vm1874_vm3, %v5201_v31  ;;  %4366 = vmatprep.subr.bf16.mxu1 %v4365_v58  ;;  %v1869_v58 = vld [vmem:[%s5999_s2 + $0x2a8] sm:$0xf] }
 0x11a   : > { %4368 = vmatpush1.bf16.msra.mxu1 %v4367_v60  ;;  %2068 = vmatprep.mubr.f32.mxu1 %v4878_v1  ;;  %v1801_v60 = vld [vmem:[%s5999_s2 + $0x88] sm:$0xff] }
 0x11b   : > { %4380 = vmatpush1.bf16.msra.mxu0 %v4379_v61  ;;  %4370 = vmatprep.subr.bf16.mxu1 %v4369_v62  ;;  %v1819_v61 = vld [vmem:[%s5999_s2 + $0x118] sm:$0xff]  ;;  %v4403_v62 = vpack.c.bf16 %v1848_v57, %v1830_v56 }
 0x11c   : > { %4154 = vmatprep.subr.msk.mxu0 %vm1878_vm2, %v1861_v59  ;;  %v1868_v59 = vld [vmem:[%s5999_s2 + $0x2a0] sm:$0xf]  ;;  %v4421_v5 = vpack.c.bf16 %v1819_v61, %v1801_v60 }
 0x11e   : > { %4372 = vmatpush1.bf16.msra.mxu1 %v4371_v4  ;;  %v1867_v4 = vld [vmem:[%s5999_s2 + $0x298] sm:$0xf] }
 0x11f   : > { %4155 = vmatpush1.msk.msra.mxu0 %vm1878_vm2, %v1860_v7  ;;  %4151 = vmatprep.subr.msk.mxu1 %vm1878_vm2, %v1859_v10  ;;  %v1817_v7 = vld [vmem:[%s5999_s2 + $0x108] sm:$0xff]  ;;  %v1816_v10 = vld [vmem:[%s5999_s2 + $0x100] sm:$0xff] }
 0x120   : > { %4156 = vmatmul.mubr.msk.f32.vlgmr.msra.gmra.mrb[16].mxu0 %vm1874_vm3, %v5201_v31  ;;  %4390 = vmatprep.subr.bf16.mxu0 %v4389_v11  ;;  %v1836_v11 = vld [vmem:[%s5999_s2 + $0x1a0] sm:$0xff]  ;;  %v4413_v17 = vpack.c.bf16 %v1817_v7, %v1799_v6 }
 0x121   : > { %4392 = vmatpush1.bf16.msra.mxu0 %v4391_v14  ;;  %2281 = vmatprep.mubr.f32.mxu0 %v4878_v1  ;;  %v1835_v14 = vld [vmem:[%s5999_s2 + $0x198] sm:$0xff]  ;;  %v4427_v19 = vpack.c.bf16 %v1854_v13, %v1836_v11 }
 0x122   : > { %4152 = vmatpush1.msk.msra.mxu1 %vm1878_vm2, %v1858_v22  ;;  %4394 = vmatprep.subr.bf16.mxu0 %v4393_v18  ;;  %v4415_v18 = vpack.c.bf16 %v1816_v10, %v1798_v9  ;;  %v4417_v20 = vpack.c.bf16 %v1853_v15, %v1835_v14  ;;  %v1852_v22 = vld [vmem:[%s5999_s2 + $0x220] sm:$0xff] }
 0x123   : > { %4153 = vmatmul.mubr.msk.f32.vlgmr.msra.gmra.mrb[10].mxu1 %vm1874_vm3, %v5201_v31  ;;  %4382 = vmatprep.subr.bf16.mxu1 %v4381_v23  ;;  %v1873_v23 = vld [vmem:[%s5999_s2 + $0x2c8] sm:$0xf] }
 0x124   : > { %4384 = vmatpush1.bf16.msra.mxu1 %v4383_v24  ;;  %2210 = vmatprep.mubr.f32.mxu1 %v4878_v1  ;;  %v4419_v24 = vpack.c.bf16 %v1852_v22, %v1834_v21 }
 0x125   : > { %4396 = vmatpush1.bf16.msra.mxu0 %v4395_v25  ;;  %4386 = vmatprep.subr.bf16.mxu1 %v4385_v26  ;;  %v1872_v25 = vld [vmem:[%s5999_s2 + $0x2c0] sm:$0xf]  ;;  %v1871_v26 = vld [vmem:[%s5999_s2 + $0x2b8] sm:$0xf] }
 0x126   : > { %4160 = vmatprep.subr.msk.mxu0 %vm1878_vm2, %v1865_v29  ;;  %v2595_v29 = vld [vmem:[%s6005_s8 + $0x8] sm:$0xff] }
 0x127   : > { %2605 = vperm.xlu1 %4493, %v2595_v29  }
 0x128   : > { %4388 = vmatpush1.bf16.msra.mxu1 %v4387_v33 }
 0x129   : > { %4161 = vmatpush1.msk.msra.mxu0 %vm1878_vm2, %v1864_v36  ;;  %4157 = vmatprep.subr.msk.mxu1 %vm1878_vm2, %v1863_v39 }
 0x12a   : > { %4162 = vmatmul.mubr.msk.f32.vlgmr.msra.gmra.mrb[10].mxu0 %vm1874_vm3, %v5201_v31  ;;  %4406 = vmatprep.subr.bf16.mxu0 %v4405_v40 }
 0x12b   : > { %4408 = vmatpush1.bf16.msra.mxu0 %v4407_v43  ;;  %2423 = vmatprep.mubr.f32.mxu0 %v4878_v1 }
 0x12c   : > { %4158 = vmatpush1.msk.msra.mxu1 %vm1878_vm2, %v1862_v51  ;;  %4410 = vmatprep.subr.bf16.mxu0 %v4409_v47  ;;  %v5490_v51 = vld [vmem:[%s6004_s7 + $0x18] sm:$0xff] }
 0x12d   : > { %4159 = vmatmul.mubr.msk.f32.vlgmr.msra.gmra.mrb[14].mxu1 %vm1874_vm3, %v5201_v31  ;;  %4398 = vmatprep.subr.bf16.mxu1 %v4397_v52 }
 0x12e   : > { %4400 = vmatpush1.bf16.msra.mxu1 %v4399_v53  ;;  %2352 = vmatprep.mubr.f32.mxu1 %v4878_v1 }
 0x12f   : > { %4412 = vmatpush1.bf16.msra.mxu0 %v4411_v54  ;;  %4402 = vmatprep.subr.bf16.mxu1 %v4401_v55 }
 0x130   : > { %4166 = vmatprep.subr.msk.mxu0 %vm1878_vm2, %v1869_v58  ;;  %2615 = vperm.xlu1 %4493, %v2597_v30  }
 0x132   : > { %4404 = vmatpush1.bf16.msra.mxu1 %v4403_v62 }
 0x133   : > { %4167 = vmatpush1.msk.msra.mxu0 %vm1878_vm2, %v1868_v59  ;;  %4163 = vmatprep.subr.msk.mxu1 %vm1878_vm2, %v1867_v4 }
 0x134   : > { %4168 = vmatmul.mubr.msk.f32.vlgmr.msra.gmra.mrb[12].mxu0 %vm1874_vm3, %v5201_v31  ;;  %4422 = vmatprep.subr.bf16.mxu0 %v4421_v5 }
 0x135   : > { %4424 = vmatpush1.bf16.msra.mxu0 %v4423_v8  ;;  %2565 = vmatprep.mubr.f32.mxu0 %v4878_v1 }
 0x136   : > { %4164 = vmatpush1.msk.msra.mxu1 %vm1878_vm2, %v1866_v16  ;;  %4426 = vmatprep.subr.bf16.mxu0 %v4425_v12 }
 0x137   : > { %4165 = vmatmul.mubr.msk.f32.vlgmr.msra.gmra.mrb[16].mxu1 %vm1874_vm3, %v5201_v31  ;;  %4414 = vmatprep.subr.bf16.mxu1 %v4413_v17 }
 0x138   : > { %4416 = vmatpush1.bf16.msra.mxu1 %v4415_v18  ;;  %2494 = vmatprep.mubr.f32.mxu1 %v4878_v1 }
 0x139   : > { %4428 = vmatpush1.bf16.msra.mxu0 %v4427_v19  ;;  %4418 = vmatprep.subr.bf16.mxu1 %v4417_v20 }
 0x13a   : > { %4172 = vmatprep.subr.msk.mxu0 %vm1878_vm2, %v1873_v23 }
 0x13c   : > { %4420 = vmatpush1.bf16.msra.mxu1 %v4419_v24 }
 0x13d   : > { %4173 = vmatpush1.msk.msra.mxu0 %vm1878_vm2, %v1872_v25  ;;  %4169 = vmatprep.subr.msk.mxu1 %vm1878_vm2, %v1871_v26  ;;  %v5609_v25 = vpop.permute.xlu0 %2610 }
 0x13e   : > { %4174 = vmatmul.mubr.msk.f32.vlgmr.msra.gmra.mrb[14].mxu0 %vm1874_vm3, %v5201_v31 }
 0x13f   : > { %2694 = vmatprep.mubr.f32.mxu0 %v4878_v1 }
 0x140   : > { %4170 = vmatpush1.msk.msra.mxu1 %vm1878_vm2, %v1870_v27 }
 0x141   : > { %4171 = vmatmul.mubr.msk.f32.vlgmr.msra.gmra.mrb[18].mxu1 %vm1874_vm3, %v5201_v31 }
 0x142   : > { %2783 = vmatprep.mubr.f32.mxu1 %v4878_v1 }
 0x191   : > { %v5601_v13 = vpop.permute.xlu1 %2600 }
 0x1a6   : > { %v5605_v18 = vpop.permute.xlu1 %2605 }
 0x1d1   : > { %v1352_v32 = vpop.f32.mrb[12].mxu1 }
 0x1d2   : > { %v1354_v33 = vpop.f32.mrb[13].mxu1  ;;  %v1353_v39 = vadd.f32 %v1352_v32, %v5455_v34 }
 0x1d3   : > { %v1355_v40 = vadd.f32 %v1354_v33, %v5455_v34  ;;  %v5613_v33 = vpop.permute.xlu1 %2615 }
 0x1ec   : > { %v1999_v31 = vpop.f32.mrb[8].mxu1 }
 0x1ed   : > { %v2001_v35 = vpop.f32.mrb[9].mxu1  ;;  %v4429_v37 = vadd.f32 %v1999_v31, %v5455_v34 }
 0x1ee   : > { %v4430_v36 = vadd.f32 %v2001_v35, %v5455_v34 }
 0x1f0   : > { %2630 = vmatprep.subr.mxu0 %v4430_v36 }
 0x1f1   : > { %2631 = vmatpush1.msra.mxu0 %v4429_v37 }
 0x1f2   : > { %4175 = vmatmul.mubr.msk.f32.vlgmr.msra.gmra.mrb[18].mxu0 %vm1140_vm1, %v5462_v38 }
 0x1f3   : > { %v2141_v41 = vpop.f32.mrb[16].mxu0  ;;  %2700 = vmatprep.mubr.f32.mxu0 %v4878_v1 }
 0x1f4   : > { %v2580_v43 = vadd.f32 %v2141_v41, %v1353_v39  ;;  %v2143_v44 = vpop.f32.mrb[17].mxu0 }
 0x1f5   : > { %v2581_v45 = vadd.f32 %v2143_v44, %v1355_v40 }
 0x1f6   : > { %v2070_v46 = vpop.f32.mrb[10].mxu1  ;;  %4176 = vmatmul.mubr.msk.f32.gmra.mrb[20].mxu0 %vm1140_vm1, %v5472_v42 }
 0x1f7   : > { %v2072_v47 = vpop.f32.mrb[11].mxu1  ;;  %2808 = vmatprep.subr.mxu0 %v2581_v45  ;;  %2706 = vmatprep.mubr.f32.mxu0 %v4878_v1  ;;  %v4431_v50 = vadd.f32 %v2070_v46, %v5455_v34 }
 0x1f8   : > { %v4432_v49 = vadd.f32 %v2072_v47, %v5455_v34  ;;  %2809 = vmatpush1.msra.mxu0 %v2580_v43 }
 0x1fa   : > { %4177 = vmatmul.mubr.msk.f32.gmra.mrb[22].mxu0 %vm1140_vm1, %v5480_v48  ;;  %2719 = vmatprep.subr.mxu1 %v4432_v49 }
 0x1fb   : > { %2720 = vmatpush1.msra.mxu1 %v4431_v50  ;;  %2712 = vmatprep.mubr.f32.mxu0 %v4878_v1 }
 0x1fc   : > { %4179 = vmatmul.mubr.msk.f32.vlgmr.msra.gmra.mrb[20].mxu1 %vm1140_vm1, %v5462_v38 }
 0x1fd   : > { %v2283_v52 = vpop.f32.mrb[10].mxu0  ;;  %2789 = vmatprep.mubr.f32.mxu1 %v4878_v1 }
 0x1fe   : > { %4178 = vmatmul.mubr.msk.f32.gmra.mrb[24].mxu0 %vm1140_vm1, %v5490_v51  ;;  %v2285_v53 = vpop.f32.mrb[11].mxu0  ;;  %v4439_v56 = vadd.f32 %v2283_v52, %v5455_v34 }
 0x1ff   : > { %v4440_v54 = vadd.f32 %v2285_v53, %v5455_v34  ;;  %2872 = vmatprep.mubr.f32.mxu0 %v4878_v1 }
 0x200   : > { %v2212_v55 = vpop.f32.mrb[14].mxu1  ;;  %4180 = vmatmul.mubr.msk.f32.gmra.mrb[22].mxu1 %vm1140_vm1, %v5472_v42 }
 0x201   : > { %v2214_v57 = vpop.f32.mrb[15].mxu1  ;;  %2986 = vmatprep.subr.mxu0 %v4440_v54  ;;  %2795 = vmatprep.mubr.f32.mxu1 %v4878_v1  ;;  %v4437_v60 = vadd.f32 %v2212_v55, %v5455_v34 }
 0x202   : > { %v4438_v58 = vadd.f32 %v2214_v57, %v5455_v34  ;;  %4183 = vmatmul.mubr.msk.f32.vlgmr.msra.gmra.mrb[26].mxu0 %vm1140_vm1, %v5462_v38 }
 0x203   : > { %2987 = vmatpush1.msra.mxu0 %v4439_v56  ;;  %2878 = vmatprep.mubr.f32.mxu0 %v4878_v1 }
 0x204   : > { %4181 = vmatmul.mubr.msk.f32.gmra.mrb[24].mxu1 %vm1140_vm1, %v5480_v48  ;;  %2897 = vmatprep.subr.mxu1 %v4438_v58 }
 0x205   : > { %2898 = vmatpush1.msra.mxu1 %v4437_v60  ;;  %2801 = vmatprep.mubr.f32.mxu1 %v4878_v1 }
 0x206   : > { %4184 = vmatmul.mubr.msk.f32.gmra.mrb[28].mxu0 %vm1140_vm1, %v5472_v42 }
 0x207   : > { %v2425_v61 = vpop.f32.mrb[12].mxu0  ;;  %2884 = vmatprep.mubr.f32.mxu0 %v4878_v1 }
 0x208   : > { %4182 = vmatmul.mubr.msk.f32.gmra.mrb[26].mxu1 %vm1140_vm1, %v5490_v51  ;;  %v2427_v62 = vpop.f32.mrb[13].mxu0  ;;  %v4443_v4 = vadd.f32 %v2425_v61, %v5455_v34 }
 0x209   : > { %v4444_v63 = vadd.f32 %v2427_v62, %v5455_v34  ;;  %2961 = vmatprep.mubr.f32.mxu1 %v4878_v1 }
 0x20a   : > { %v2354_v0 = vpop.f32.mrb[16].mxu1  ;;  %4185 = vmatmul.mubr.msk.f32.gmra.mrb[30].mxu0 %vm1140_vm1, %v5480_v48 }
 0x20b   : > { %v2356_v59 = vpop.f32.mrb[17].mxu1  ;;  %3164 = vmatprep.subr.mxu0 %v4444_v63  ;;  %2890 = vmatprep.mubr.f32.mxu0 %v4878_v1  ;;  %v4441_v3 = vadd.f32 %v2354_v0, %v5455_v34 }
 0x20c   : > { %v4442_v2 = vadd.f32 %v2356_v59, %v5455_v34  ;;  %4187 = vmatmul.mubr.msk.f32.vlgmr.msra.gmra.mrb[28].mxu1 %vm1140_vm1, %v5462_v38 }
 0x20d   : > { %2967 = vmatprep.mubr.f32.mxu1 %v4878_v1 }
 0x20e   : > { %4186 = vmatmul.mubr.msk.f32.gmra.mrb[32].mxu0 %vm1140_vm1, %v5490_v51  ;;  %3075 = vmatprep.subr.mxu1 %v4442_v2 }
 0x20f   : > { %3076 = vmatpush1.msra.mxu1 %v4441_v3  ;;  %3050 = vmatprep.mubr.f32.mxu0 %v4878_v1 }
 0x210   : > { %4188 = vmatmul.mubr.msk.f32.gmra.mrb[30].mxu1 %vm1140_vm1, %v5472_v42 }
 0x211   : > { %v2567_v5 = vpop.f32.mrb[14].mxu0  ;;  %2973 = vmatprep.mubr.f32.mxu1 %v4878_v1 }
 0x212   : > { %4191 = vmatmul.mubr.msk.f32.vlgmr.msra.gmra.mrb[34].mxu0 %vm1140_vm1, %v5462_v38  ;;  %v2569_v6 = vpop.f32.mrb[15].mxu0  ;;  %v4447_v12 = vadd.f32 %v2567_v5, %v5455_v34 }
 0x213   : > { %3165 = vmatpush1.msra.mxu0 %v4443_v4  ;;  %v4448_v7 = vadd.f32 %v2569_v6, %v5455_v34  ;;  %3056 = vmatprep.mubr.f32.mxu0 %v4878_v1 }
 0x214   : > { %v2496_v8 = vpop.f32.mrb[18].mxu1  ;;  %4189 = vmatmul.mubr.msk.f32.gmra.mrb[32].mxu1 %vm1140_vm1, %v5480_v48 }
 0x215   : > { %v2498_v9 = vpop.f32.mrb[19].mxu1  ;;  %3342 = vmatprep.subr.mxu0 %v4448_v7  ;;  %2979 = vmatprep.mubr.f32.mxu1 %v4878_v1  ;;  %v4445_v11 = vadd.f32 %v2496_v8, %v5455_v34 }
 0x216   : > { %v4446_v10 = vadd.f32 %v2498_v9, %v5455_v34  ;;  %4192 = vmatmul.mubr.msk.f32.gmra.mrb[36].mxu0 %vm1140_vm1, %v5472_v42 }
 0x217   : > { %3062 = vmatprep.mubr.f32.mxu0 %v4878_v1 }
 0x218   : > { %4190 = vmatmul.mubr.msk.f32.gmra.mrb[34].mxu1 %vm1140_vm1, %v5490_v51  ;;  %3253 = vmatprep.subr.mxu1 %v4446_v10 }
 0x219   : > { %3139 = vmatprep.mubr.f32.mxu1 %v4878_v1 }
 0x21a   : > { %4193 = vmatmul.mubr.msk.f32.gmra.mrb[38].mxu0 %vm1140_vm1, %v5480_v48 }
 0x21b   : > { %3068 = vmatprep.mubr.f32.mxu0 %v4878_v1 }
 0x21c   : > { %4195 = vmatmul.mubr.msk.f32.vlgmr.msra.gmra.mrb[36].mxu1 %vm1140_vm1, %v5462_v38 }
 0x21d   : > { %3254 = vmatpush1.msra.mxu1 %v4445_v11  ;;  %3145 = vmatprep.mubr.f32.mxu1 %v4878_v1 }
 0x21e   : > { %4194 = vmatmul.mubr.msk.f32.gmra.mrb[40].mxu0 %vm1140_vm1, %v5490_v51 }
 0x21f   : > { %3228 = vmatprep.mubr.f32.mxu0 %v4878_v1 }
 0x220   : > { %4196 = vmatmul.mubr.msk.f32.gmra.mrb[38].mxu1 %vm1140_vm1, %v5472_v42 }
 0x221   : > { %3151 = vmatprep.mubr.f32.mxu1 %v4878_v1 }
 0x222   : > { %4199 = vmatmul.mubr.msk.f32.vlgmr.msra.gmra.mrb[42].mxu0 %vm1140_vm1, %v5462_v38 }
 0x223   : > { %3343 = vmatpush1.msra.mxu0 %v4447_v12  ;;  %3234 = vmatprep.mubr.f32.mxu0 %v4878_v1 }
 0x224   : > { %4197 = vmatmul.mubr.msk.f32.gmra.mrb[40].mxu1 %vm1140_vm1, %v5480_v48 }
 0x225   : > { %3157 = vmatprep.mubr.f32.mxu1 %v4878_v1 }
 0x226   : > { %4200 = vmatmul.mubr.msk.f32.gmra.mrb[44].mxu0 %vm1140_vm1, %v5472_v42 }
 0x227   : > { %3240 = vmatprep.mubr.f32.mxu0 %v4878_v1 }
 0x228   : > { %4198 = vmatmul.mubr.msk.f32.gmra.mrb[42].mxu1 %vm1140_vm1, %v5490_v51 }
 0x229   : > { %3317 = vmatprep.mubr.f32.mxu1 %v4878_v1 }
 0x22a   : > { %4201 = vmatmul.mubr.msk.f32.gmra.mrb[46].mxu0 %vm1140_vm1, %v5480_v48 }
 0x22b   : > { %3246 = vmatprep.mubr.f32.mxu0 %v4878_v1 }
 0x22c   : > { %4203 = vmatmul.mubr.msk.f32.vlgmr.msra.gmra.mrb[44].mxu1 %vm1140_vm1, %v5462_v38 }
 0x22d   : > { %3323 = vmatprep.mubr.f32.mxu1 %v4878_v1 }
 0x22e   : > { %4202 = vmatmul.mubr.msk.f32.gmra.mrb[48].mxu0 %vm1140_vm1, %v5490_v51 }
 0x22f   : > { %3406 = vmatprep.mubr.f32.mxu0 %v4878_v1 }
 0x230   : > { %4204 = vmatmul.mubr.msk.f32.gmra.mrb[46].mxu1 %vm1140_vm1, %v5472_v42 }
 0x231   : > { %3329 = vmatprep.mubr.f32.mxu1 %v4878_v1 }
 0x232   : > { %4207 = vmatmul.mubr.msk.f32.vlgmr.msra.gmra.mrb[50].mxu0 %vm1140_vm1, %v5462_v38 }
 0x233   : > { %3412 = vmatprep.mubr.f32.mxu0 %v4878_v1 }
 0x234   : > { %4205 = vmatmul.mubr.msk.f32.gmra.mrb[48].mxu1 %vm1140_vm1, %v5480_v48 }
 0x235   : > { %3335 = vmatprep.mubr.f32.mxu1 %v4878_v1 }
 0x236   : > { %4208 = vmatmul.mubr.msk.f32.gmra.mrb[52].mxu0 %vm1140_vm1, %v5472_v42 }
 0x237   : > { %3418 = vmatprep.mubr.f32.mxu0 %v4878_v1 }
 0x238   : > { %4206 = vmatmul.mubr.msk.f32.gmra.mrb[50].mxu1 %vm1140_vm1, %v5490_v51 }
 0x23a   : > { %4209 = vmatmul.mubr.msk.f32.gmra.mrb[54].mxu0 %vm1140_vm1, %v5480_v48 }
 0x23b   : > { %3424 = vmatprep.mubr.f32.mxu0 %v4878_v1 }
 0x23e   : > { %4210 = vmatmul.mubr.msk.f32.gmra.mrb[56].mxu0 %vm1140_vm1, %v5490_v51 }
 0x2c5   : > { %v2696_v14 = vpop.f32.mrb[18].mxu0 }
 0x2c6   : > { %v2698_v15 = vpop.f32.mrb[19].mxu0  ;;  %v2697_v16 = vadd.f32 %v2696_v14, %v5601_v13 }
 0x2c7   : > { %v2699_v17 = vadd.f32 %v2698_v15, %v5601_v13 }
 0x2c8   : > { %v4211_v19 = vmul.f32 -1.442695, %v2697_v16 }
 0x2c9   : > { %v2702_v20 = vpop.f32.mrb[20].mxu0  ;;  %v4212_v21 = vmul.f32 -1.442695, %v2699_v17 }
 0x2ca   : > { %4494 = vpow2.f32 %v4211_v19  ;;  %v2704_v22 = vpop.f32.mrb[21].mxu0  ;;  %v2703_v1 = vadd.f32 %v2702_v20, %v5605_v18 }
 0x2cb   : > { %4496 = vpow2.f32 %v4212_v21  ;;  %v2705_v23 = vadd.f32 %v2704_v22, %v5605_v18 }
 0x2cc   : > { %v4229_v24 = vmul.f32 -1.442695, %v2703_v1 }
 0x2cd   : > { %v2708_v26 = vpop.f32.mrb[22].mxu0  ;;  %v4230_v27 = vmul.f32 -1.442695, %v2705_v23 }
 0x2ce   : > { %v2709_v28 = vadd.f32 %v2708_v26, %v5609_v25  ;;  %v2710_v29 = vpop.f32.mrb[23].mxu0  ;;  %4498 = vpow2.f32 %v4229_v24 }
 0x2cf   : > { %v2711_v30 = vadd.f32 %v2710_v29, %v5609_v25  ;;  %4500 = vpow2.f32 %v4230_v27  ;;  %v2785_v32 = vpop.f32.mrb[20].mxu1 }
 0x2d0   : > { %v4247_v31 = vmul.f32 -1.442695, %v2709_v28  ;;  %v2786_v34 = vadd.f32 %v2785_v32, %v5601_v13  ;;  %v2787_v35 = vpop.f32.mrb[21].mxu1 }
 0x2d1   : > { %v4248_v36 = vmul.f32 -1.442695, %v2711_v30  ;;  %v2788_v37 = vadd.f32 %v2787_v35, %v5601_v13  ;;  %v2714_v38 = vpop.f32.mrb[24].mxu0 }
 0x2d2   : > { %4502 = vpow2.f32 %v4247_v31  ;;  %v4213_v39 = vmul.f32 -1.442695, %v2786_v34  ;;  %v2715_v40 = vadd.f32 %v2714_v38, %v5613_v33  ;;  %v2716_v41 = vpop.f32.mrb[25].mxu0  ;;  %v4782_v31 = vld [vmem:[%s4964_s20] sm:$0xff] }
 0x2d3   : > { %4504 = vpow2.f32 %v4248_v36  ;;  %v4214_v42 = vmul.f32 -1.442695, %v2788_v37  ;;  %v2791_v43 = vpop.f32.mrb[22].mxu1  ;;  %v2717_v54 = vadd.f32 %v2716_v41, %v5613_v33  ;;  %v4783_v37 = vld [vmem:[%s4964_s20 + $0x8] sm:$0xff] }
 0x2d4   : > { %v4495_v44 = vpop.eup %4494  ;;  %4506 = vpow2.f32 %v4213_v39  ;;  %v2792_v45 = vadd.f32 %v2791_v43, %v5605_v18  ;;  %v2793_v46 = vpop.f32.mrb[23].mxu1  ;;  %v4265_v47 = vmul.f32 -1.442695, %v2715_v40 }
 0x2d5   : > { %v4497_v48 = vpop.eup %4496  ;;  %v3647_v49 = vadd.f32 1.0, %v4495_v44  ;;  %4508 = vpow2.f32 %v4214_v42  ;;  %v2794_v50 = vadd.f32 %v2793_v46, %v5605_v18  ;;  %v2874_v51 = vpop.f32.mrb[26].mxu0  ;;  %v4266_v3 = vmul.f32 -1.442695, %v2717_v54 }
 0x2d6   : > { %v3648_v52 = vadd.f32 1.0, %v4497_v48  ;;  %v4231_v53 = vmul.f32 -1.442695, %v2792_v45  ;;  %4510 = vpow2.f32 %v4265_v47  ;;  %v2876_v55 = vpop.f32.mrb[27].mxu0  ;;  %v2875_v11 = vadd.f32 %v2874_v51, %v5601_v13  ;;  %v4784_v51 = vld [vmem:[%s4964_s20 + $0x90] sm:$0xff] }
 0x2d7   : > { %4512 = vrcp.f32 %v3647_v49  ;;  %v4232_v56 = vmul.f32 -1.442695, %v2794_v50  ;;  %v2797_v57 = vpop.f32.mrb[24].mxu1  ;;  %v2877_v23 = vadd.f32 %v2876_v55, %v5601_v13 }
 0x2d8   : > { %v4499_v58 = vpop.eup %4498  ;;  %4514 = vrcp.f32 %v3648_v52  ;;  %v2798_v60 = vadd.f32 %v2797_v57, %v5609_v25  ;;  %v2799_v61 = vpop.f32.mrb[25].mxu1  ;;  %v4215_v28 = vmul.f32 -1.442695, %v2875_v11 }
 0x2d9   : > { %v4501_v62 = vpop.eup %4500  ;;  %v3665_v63 = vadd.f32 1.0, %v4499_v58  ;;  %4516 = vpow2.f32 %v4231_v53  ;;  %v2880_v0 = vpop.f32.mrb[28].mxu0  ;;  %v2800_v7 = vadd.f32 %v2799_v61, %v5609_v25  ;;  %v4216_v42 = vmul.f32 -1.442695, %v2877_v23 }
 0x2da   : > { %v3666_v59 = vadd.f32 1.0, %v4501_v62  ;;  %4518 = vpow2.f32 %v4232_v56  ;;  %v4249_v2 = vmul.f32 -1.442695, %v2798_v60  ;;  %v2882_v4 = vpop.f32.mrb[29].mxu0  ;;  %v2881_v29 = vadd.f32 %v2880_v0, %v5605_v18  ;;  %v4785_v56 = vld [vmem:[%s4964_s20 + $0x98] sm:$0xff] }
 0x2db   : > { %4520 = vrcp.f32 %v3665_v63  ;;  %v5622_v5 = vpop.f32.mrb[26].mxu1  ;;  %v4250_v1 = vmul.f32 -1.442695, %v2800_v7  ;;  %v2883_v43 = vadd.f32 %v2882_v4, %v5605_v18  ;;  %v4786_v7 = vld [vmem:[%s4964_s20 + $0x120] sm:$0xff] }
 0x2dc   : > { %v4503_v6 = vpop.eup %4502  ;;  %4522 = vrcp.f32 %v3666_v59  ;;  %v5625_v8 = vpop.f32.mrb[27].mxu1  ;;  %v4233_v47 = vmul.f32 -1.442695, %v2881_v29  ;;  %v2804_v58 = vadd.f32 %v5622_v5, %v5613_v33 }
 0x2dd   : > { %v4505_v9 = vpop.eup %4504  ;;  %v3683_v10 = vadd.f32 1.0, %v4503_v6  ;;  %4524 = vpow2.f32 %v4249_v2  ;;  %v2886_v12 = vpop.f32.mrb[30].mxu0  ;;  %v4234_v63 = vmul.f32 -1.442695, %v2883_v43  ;;  %v2806_v0 = vadd.f32 %v5625_v8, %v5613_v33  ;;  %v4787_v8 = vld [vmem:[%s4964_s20 + $0x128] sm:$0xff] }
 0x2de   : > { %v4507_v14 = vpop.eup %4506  ;;  %v3684_v15 = vadd.f32 1.0, %v4505_v9  ;;  %4526 = vpow2.f32 %v4266_v3  ;;  %v2888_v16 = vpop.f32.mrb[31].mxu0  ;;  %v2887_v48 = vadd.f32 %v2886_v12, %v5609_v25 }
 0x2df   : > { %v4509_v17 = vpop.eup %4508  ;;  %4528 = vrcp.f32 %v3683_v10  ;;  %v3649_v19 = vadd.f32 1.0, %v4507_v14  ;;  %v5628_v20 = vpop.f32.mrb[28].mxu1  ;;  %v2889_v53 = vadd.f32 %v2888_v16, %v5609_v25 }
 0x2e0   : > { %v4511_v21 = vpop.eup %4510  ;;  %4530 = vrcp.f32 %v3684_v15  ;;  %v3650_v22 = vadd.f32 1.0, %v4509_v17  ;;  %v5631_v24 = vpop.f32.mrb[29].mxu1  ;;  %v4251_v4 = vmul.f32 -1.442695, %v2887_v48  ;;  %v4267_v15 = vmul.f32 -1.442695, %v2804_v58 }
 0x2e1   : > { %v4513_v26 = vpop.eup %4512  ;;  %4532 = vrcp.f32 %v3649_v19  ;;  %v3701_v27 = vadd.f32 1.0, %v4511_v21  ;;  %v5641_v30 = vpop.f32.mrb[32].mxu0  ;;  %v4252_v10 = vmul.f32 -1.442695, %v2889_v53  ;;  %v2964_v16 = vadd.f32 %v5628_v20, %v5601_v13  ;;  %v4788_v21 = vld [vmem:[%s4964_s20 + $0x10] sm:$0xff]  ;;  %v4792_v53 = vld [vmem:[%s4964_s20 + $0xa8] sm:$0xff] }
 0x2e2   : > { %v4515_v32 = vpop.eup %4514  ;;  %v3863_v34 = vmul.f32 %v4782_v31, %v4513_v26  ;;  %4534 = vrcp.f32 %v3650_v22  ;;  %v5644_v35 = vpop.f32.mrb[33].mxu0  ;;  %v2966_v23 = vadd.f32 %v5631_v24, %v5601_v13  ;;  %v4790_v31 = vld [vmem:[%s4964_s20 + $0x1b0] sm:$0xff] }
 0x2e3   : > { %v4517_v36 = vpop.eup %4516  ;;  %v3864_v38 = vmul.f32 %v4783_v37, %v4515_v32  ;;  %4536 = vrcp.f32 %v3701_v27  ;;  %v5647_v39 = vpop.f32.mrb[30].mxu1 }
 0x2e4   : > { %v4519_v40 = vpop.eup %4518  ;;  %3935 = vst [vmem:[%s5638_s16] sm:$0xff] %v3863_v34  ;;  %v3667_v41 = vadd.f32 1.0, %v4517_v36  ;;  %4538 = vpow2.f32 %v4250_v1  ;;  %v5651_v44 = vpop.f32.mrb[31].mxu1  ;;  %v4268_v1 = vmul.f32 -1.442695, %v2806_v0 }
 0x2e5   : > { %v4521_v45 = vpop.eup %4520  ;;  %3936 = vst [vmem:[%s5638_s16 + $0x8] sm:$0xff] %v3864_v38  ;;  %v3668_v46 = vadd.f32 1.0, %v4519_v40  ;;  %4540 = vpow2.f32 %v4215_v28  ;;  %v5655_v49 = vpop.f32.mrb[34].mxu0  ;;  %v4789_v28 = vld [vmem:[%s4964_s20 + $0x18] sm:$0xff]  ;;  %v4217_v38 = vmul.f32 -1.442695, %v2964_v16  ;;  %v2970_v40 = vadd.f32 %v5647_v39, %v5605_v18 }
 0x2e6   : > { %v4523_v50 = vpop.eup %4522  ;;  %v3881_v52 = vmul.f32 %v4784_v51, %v4521_v45  ;;  %4542 = vrcp.f32 %v3667_v41  ;;  %v5659_v54 = vpop.f32.mrb[35].mxu0  ;;  %v4218_v45 = vmul.f32 -1.442695, %v2966_v23 }
 0x2e7   : > { %v4525_v55 = vpop.eup %4524  ;;  %v3882_v57 = vmul.f32 %v4785_v56, %v4523_v50  ;;  %4544 = vrcp.f32 %v3668_v46  ;;  %v5664_v60 = vpop.f32.mrb[32].mxu1  ;;  %v2972_v46 = vadd.f32 %v5651_v44, %v5605_v18  ;;  %v4791_v50 = vld [vmem:[%s4964_s20 + $0xa0] sm:$0xff]  ;;  %v4235_v44 = vmul.f32 -1.442695, %v2970_v40 }
 0x2e8   : > { %v4527_v61 = vpop.eup %4526  ;;  %3953 = vst [vmem:[%s5638_s16 + $0x90] sm:$0xff] %v3881_v52  ;;  %v3685_v62 = vadd.f32 1.0, %v4525_v55  ;;  %4546 = vpow2.f32 %v4216_v42  ;;  %v5669_v59 = vpop.f32.mrb[33].mxu1 }
 0x2e9   : > { %v4529_v2 = vpop.eup %4528  ;;  %3954 = vst [vmem:[%s5638_s16 + $0x98] sm:$0xff] %v3882_v57  ;;  %v3702_v3 = vadd.f32 1.0, %v4527_v61  ;;  %4548 = vpow2.f32 %v4233_v47  ;;  %v5672_v5 = vpop.f32.mrb[36].mxu0  ;;  %v4236_v0 = vmul.f32 -1.442695, %v2972_v46  ;;  %v2978_v40 = vadd.f32 %v5669_v59, %v5609_v25 }
 0x2ea   : > { %v4531_v6 = vpop.eup %4530  ;;  %v3899_v9 = vmul.f32 %v4786_v7, %v4529_v2  ;;  %4550 = vrcp.f32 %v3685_v62  ;;  %v5675_v11 = vpop.f32.mrb[37].mxu0 }
 0x2eb   : > { %v4533_v12 = vpop.eup %4532  ;;  %v3900_v14 = vmul.f32 %v4787_v8, %v4531_v6  ;;  %4552 = vrcp.f32 %v3702_v3  ;;  %v5680_v17 = vpop.f32.mrb[34].mxu1  ;;  %v2893_v8 = vadd.f32 %v5641_v30, %v5613_v33 }
 0x2ec   : > { %v4535_v19 = vpop.eup %4534  ;;  %3971 = vst [vmem:[%s5638_s16 + $0x120] sm:$0xff] %v3899_v9  ;;  %v3865_v22 = vmul.f32 %v4788_v21, %v4533_v12  ;;  %4554 = vpow2.f32 %v4234_v63  ;;  %v5686_v26 = vpop.f32.mrb[35].mxu1 }
 0x2ed   : > { %v4537_v27 = vpop.eup %4536  ;;  %3972 = vst [vmem:[%s5638_s16 + $0x128] sm:$0xff] %v3900_v14  ;;  %v3866_v20 = vmul.f32 %v4789_v28, %v4535_v19  ;;  %4556 = vpow2.f32 %v4251_v4  ;;  %v5690_v29 = vpop.f32.mrb[38].mxu0  ;;  %v4793_v4 = vld [vmem:[%s4964_s20 + $0x130] sm:$0xff]  ;;  %v2976_v19 = vadd.f32 %v5664_v60, %v5609_v25  ;;  %v2895_v60 = vadd.f32 %v5644_v35, %v5613_v33 }
 0x2ee   : > { %v4539_v32 = vpop.eup %4538  ;;  %3937 = vst [vmem:[%s5638_s16 + $0x10] sm:$0xff] %v3865_v22  ;;  %v3917_v34 = vmul.f32 %v4790_v31, %v4537_v27  ;;  %4558 = vpow2.f32 %v4252_v10  ;;  %v5694_v36 = vpop.f32.mrb[39].mxu0  ;;  %v4794_v10 = vld [vmem:[%s4964_s20 + $0x1b8] sm:$0xff]  ;;  %v4269_v31 = vmul.f32 -1.442695, %v2893_v8  ;;  %v4798_v8 = vld [vmem:[%s4964_s20 + $0xb0] sm:$0xff] }
 0x2ef   : > { %v4541_v37 = vpop.eup %4540  ;;  %3938 = vst [vmem:[%s5638_s16 + $0x18] sm:$0xff] %v3866_v20  ;;  %v3686_v24 = vadd.f32 1.0, %v4539_v32  ;;  %4560 = vpow2.f32 %v4267_v15  ;;  %v5699_v41 = vpop.f32.mrb[36].mxu1  ;;  %v4270_v59 = vmul.f32 -1.442695, %v2895_v60  ;;  %v4799_v60 = vld [vmem:[%s4964_s20 + $0xb8] sm:$0xff] }
 0x2f0   : > { %v4543_v42 = vpop.eup %4542  ;;  %3989 = vst [vmem:[%s5638_s16 + $0x1b0] sm:$0xff] %v3917_v34  ;;  %v3651_v43 = vadd.f32 1.0, %v4541_v37  ;;  %4562 = vpow2.f32 %v4268_v1  ;;  %v5704_v47 = vpop.f32.mrb[37].mxu1 }
 0x2f1   : > { %v4545_v48 = vpop.eup %4544  ;;  %v3883_v51 = vmul.f32 %v4791_v50, %v4543_v42  ;;  %4564 = vrcp.f32 %v3686_v24  ;;  %v5707_v52 = vpop.f32.mrb[40].mxu0  ;;  %v4796_v50 = vld [vmem:[%s4964_s20 + $0x20] sm:$0xff] }
 0x2f2   : > { %v4547_v39 = vpop.eup %4546  ;;  %v3884_v55 = vmul.f32 %v4792_v53, %v4545_v48  ;;  %4566 = vrcp.f32 %v3651_v43  ;;  %v5710_v56 = vpop.f32.mrb[41].mxu0 }
 0x2f3   : > { %v4549_v57 = vpop.eup %4548  ;;  %3955 = vst [vmem:[%s5638_s16 + $0xa0] sm:$0xff] %v3883_v51  ;;  %v3652_v58 = vadd.f32 1.0, %v4547_v39  ;;  %4568 = vpow2.f32 %v4217_v38  ;;  %v5713_v61 = vpop.f32.mrb[38].mxu1  ;;  %v4253_v38 = vmul.f32 -1.442695, %v2976_v19 }
 0x2f4   : > { %v4551_v62 = vpop.eup %4550  ;;  %3956 = vst [vmem:[%s5638_s16 + $0xa8] sm:$0xff] %v3884_v55  ;;  %v3669_v63 = vadd.f32 1.0, %v4549_v57  ;;  %4570 = vpow2.f32 %v4218_v45  ;;  %v5716_v2 = vpop.f32.mrb[39].mxu1  ;;  %v4795_v45 = vld [vmem:[%s4964_s20 + $0x138] sm:$0xff]  ;;  %v3053_v57 = vadd.f32 %v5655_v49, %v5601_v13  ;;  %v3059_v49 = vadd.f32 %v5672_v5, %v5605_v18 }
 0x2f5   : > { %v4553_v3 = vpop.eup %4552  ;;  %v3901_v6 = vmul.f32 %v4793_v4, %v4551_v62  ;;  %4572 = vrcp.f32 %v3652_v58  ;;  %v5719_v7 = vpop.f32.mrb[42].mxu0  ;;  %v3065_v5 = vadd.f32 %v5690_v29, %v5609_v25  ;;  %v4800_v29 = vld [vmem:[%s4964_s20 + $0x140] sm:$0xff] }
 0x2f6   : > { %v4555_v9 = vpop.eup %4554  ;;  %v3918_v12 = vmul.f32 %v4794_v10, %v4553_v3  ;;  %4574 = vrcp.f32 %v3669_v63  ;;  %v5724_v14 = vpop.f32.mrb[43].mxu0  ;;  %v4254_v63 = vmul.f32 -1.442695, %v2978_v40 }
 0x2f7   : > { %v4557_v15 = vpop.eup %4556  ;;  %3973 = vst [vmem:[%s5638_s16 + $0x130] sm:$0xff] %v3901_v6  ;;  %v3670_v16 = vadd.f32 1.0, %v4555_v9  ;;  %4576 = vpow2.f32 %v4235_v44  ;;  %v5729_v21 = vpop.f32.mrb[40].mxu1  ;;  %v4797_v6 = vld [vmem:[%s4964_s20 + $0x28] sm:$0xff] }
 0x2f8   : > { %v4559_v22 = vpop.eup %4558  ;;  %3990 = vst [vmem:[%s5638_s16 + $0x1b8] sm:$0xff] %v3918_v12  ;;  %v3687_v1 = vadd.f32 1.0, %v4557_v15  ;;  %4578 = vpow2.f32 %v4236_v0  ;;  %v5732_v23 = vpop.f32.mrb[41].mxu1  ;;  %v3055_v0 = vadd.f32 %v5659_v54, %v5601_v13 }
 0x2f9   : > { %v4561_v27 = vpop.eup %4560  ;;  %4580 = vrcp.f32 %v3670_v16  ;;  %v3688_v30 = vadd.f32 1.0, %v4559_v22  ;;  %v5734_v28 = vpop.f32.mrb[44].mxu0  ;;  %v3061_v16 = vadd.f32 %v5675_v11, %v5605_v18 }
 0x2fa   : > { %v4563_v20 = vpop.eup %4562  ;;  %4582 = vrcp.f32 %v3687_v1  ;;  %v3703_v32 = vadd.f32 1.0, %v4561_v27  ;;  %v5738_v34 = vpop.f32.mrb[45].mxu0  ;;  %v4219_v1 = vmul.f32 -1.442695, %v3053_v57 }
 0x2fb   : > { %v4565_v37 = vpop.eup %4564  ;;  %4584 = vrcp.f32 %v3688_v30  ;;  %v3704_v24 = vadd.f32 1.0, %v4563_v20  ;;  %v5742_v42 = vpop.f32.mrb[42].mxu1 }
 0x2fc   : > { %v4567_v43 = vpop.eup %4566  ;;  %v3902_v46 = vmul.f32 %v4795_v45, %v4565_v37  ;;  %4586 = vrcp.f32 %v3703_v32  ;;  %v5745_v48 = vpop.f32.mrb[43].mxu1  ;;  %v4220_v32 = vmul.f32 -1.442695, %v3055_v0  ;;  %v4238_v45 = vmul.f32 -1.442695, %v3061_v16 }
 0x2fd   : > { %v4569_v35 = vpop.eup %4568  ;;  %v3867_v51 = vmul.f32 %v4796_v50, %v4567_v43  ;;  %4588 = vrcp.f32 %v3704_v24  ;;  %v5748_v39 = vpop.f32.mrb[46].mxu0  ;;  %v4237_v24 = vmul.f32 -1.442695, %v3059_v49 }
 0x2fe   : > { %v4571_v53 = vpop.eup %4570  ;;  %3974 = vst [vmem:[%s5638_s16 + $0x138] sm:$0xff] %v3902_v46  ;;  %v3653_v55 = vadd.f32 1.0, %v4569_v35  ;;  %4590 = vpow2.f32 %v4269_v31  ;;  %v5753_v58 = vpop.f32.mrb[47].mxu0  ;;  %v3067_v46 = vadd.f32 %v5694_v36, %v5609_v25 }
 0x2ff   : > { %v4573_v44 = vpop.eup %4572  ;;  %3939 = vst [vmem:[%s5638_s16 + $0x20] sm:$0xff] %v3867_v51  ;;  %v3654_v62 = vadd.f32 1.0, %v4571_v53  ;;  %4592 = vpow2.f32 %v4253_v38  ;;  %v5758_v3 = vpop.f32.mrb[44].mxu1  ;;  %v4801_v51 = vld [vmem:[%s4964_s20 + $0x148] sm:$0xff] }
 0x300   : > { %v4575_v4 = vpop.eup %4574  ;;  %v3868_v9 = vmul.f32 %v4797_v6, %v4573_v44  ;;  %4594 = vrcp.f32 %v3653_v55  ;;  %v5763_v10 = vpop.f32.mrb[45].mxu1  ;;  %v4255_v55 = vmul.f32 -1.442695, %v3065_v5 }
 0x301   : > { %v4577_v12 = vpop.eup %4576  ;;  %v3885_v15 = vmul.f32 %v4798_v8, %v4575_v4  ;;  %4596 = vrcp.f32 %v3654_v62  ;;  %v5768_v54 = vpop.f32.mrb[48].mxu0  ;;  %v4802_v62 = vld [vmem:[%s4964_s20 + $0x1c0] sm:$0xff]  ;;  %v4803_v4 = vld [vmem:[%s4964_s20 + $0x1c8] sm:$0xff]  ;;  %v2984_v8 = vadd.f32 %v5686_v26, %v5613_v33 }
 0x302   : > { %v4579_v19 = vpop.eup %4578  ;;  %3940 = vst [vmem:[%s5638_s16 + $0x28] sm:$0xff] %v3868_v9  ;;  %v3671_v22 = vadd.f32 1.0, %v4577_v12  ;;  %4598 = vpow2.f32 %v4270_v59  ;;  %v5773_v27 = vpop.f32.mrb[49].mxu0  ;;  %v2982_v59 = vadd.f32 %v5680_v17, %v5613_v33  ;;  %v4256_v12 = vmul.f32 -1.442695, %v3067_v46 }
 0x303   : > { %v4581_v30 = vpop.eup %4580  ;;  %3957 = vst [vmem:[%s5638_s16 + $0xb0] sm:$0xff] %v3885_v15  ;;  %v3672_v20 = vadd.f32 1.0, %v4579_v19  ;;  %4600 = vpow2.f32 %v4254_v63  ;;  %v5776_v11 = vpop.f32.mrb[46].mxu1 }
 0x304   : > { %v4583_v31 = vpop.eup %4582  ;;  %v3886_v37 = vmul.f32 %v4799_v60, %v4581_v30  ;;  %4602 = vrcp.f32 %v3671_v22  ;;  %v5779_v38 = vpop.f32.mrb[47].mxu1  ;;  %v4271_v22 = vmul.f32 -1.442695, %v2982_v59  ;;  %v4805_v60 = vld [vmem:[%s4964_s20 + $0x38] sm:$0xff] }
 0x305   : > { %v4585_v40 = vpop.eup %4584  ;;  %v3903_v43 = vmul.f32 %v4800_v29, %v4583_v31  ;;  %4604 = vrcp.f32 %v3672_v20  ;;  %v5784_v35 = vpop.f32.mrb[50].mxu0  ;;  %v4804_v20 = vld [vmem:[%s4964_s20 + $0x30] sm:$0xff]  ;;  %v4272_v29 = vmul.f32 -1.442695, %v2984_v8 }
 0x306   : > { %v4587_v50 = vpop.eup %4586  ;;  %3958 = vst [vmem:[%s5638_s16 + $0xb8] sm:$0xff] %v3886_v37  ;;  %v3904_v53 = vmul.f32 %v4801_v51, %v4585_v40  ;;  %4606 = vpow2.f32 %v4219_v1  ;;  %v5790_v57 = vpop.f32.mrb[51].mxu0  ;;  %v3142_v1 = vadd.f32 %v5699_v41, %v5601_v13 }
 0x307   : > { %v4589_v44 = vpop.eup %4588  ;;  %3975 = vst [vmem:[%s5638_s16 + $0x140] sm:$0xff] %v3903_v43  ;;  %v3919_v36 = vmul.f32 %v4802_v62, %v4587_v50  ;;  %4608 = vpow2.f32 %v4220_v32  ;;  %v5794_v63 = vpop.f32.mrb[48].mxu1  ;;  %v4807_v62 = vld [vmem:[%s4964_s20 + $0xc8] sm:$0xff] }
 0x308   : > { %v4591_v0 = vpop.eup %4590  ;;  %3976 = vst [vmem:[%s5638_s16 + $0x148] sm:$0xff] %v3904_v53  ;;  %v3920_v6 = vmul.f32 %v4803_v4, %v4589_v44  ;;  %4610 = vpow2.f32 %v4237_v24  ;;  %v5798_v9 = vpop.f32.mrb[49].mxu1  ;;  %v4221_v50 = vmul.f32 -1.442695, %v3142_v1 }
 0x309   : > { %v4593_v49 = vpop.eup %4592  ;;  %3991 = vst [vmem:[%s5638_s16 + $0x1c0] sm:$0xff] %v3919_v36  ;;  %v3705_v17 = vadd.f32 1.0, %v4591_v0  ;;  %4612 = vpow2.f32 %v4238_v45  ;;  %v5803_v15 = vpop.f32.mrb[52].mxu0  ;;  %v3144_v0 = vadd.f32 %v5704_v47, %v5601_v13 }
 0x30a   : > { %v4595_v16 = vpop.eup %4594  ;;  %3992 = vst [vmem:[%s5638_s16 + $0x1c8] sm:$0xff] %v3920_v6  ;;  %v3689_v19 = vadd.f32 1.0, %v4593_v49  ;;  %4614 = vpow2.f32 %v4255_v55  ;;  %v5808_v5 = vpop.f32.mrb[53].mxu0  ;;  %v4806_v55 = vld [vmem:[%s4964_s20 + $0xc0] sm:$0xff]  ;;  %v3148_v49 = vadd.f32 %v5713_v61, %v5605_v18  ;;  %v3150_v61 = vadd.f32 %v5716_v2, %v5605_v18 }
 0x30b   : > { %v4597_v30 = vpop.eup %4596  ;;  %v3869_v32 = vmul.f32 %v4804_v20, %v4595_v16  ;;  %4616 = vrcp.f32 %v3705_v17  ;;  %v5811_v31 = vpop.f32.mrb[50].mxu1 }
 0x30c   : > { %v4599_v26 = vpop.eup %4598  ;;  %v3870_v37 = vmul.f32 %v4805_v60, %v4597_v30  ;;  %4618 = vrcp.f32 %v3689_v19  ;;  %v5814_v24 = vpop.f32.mrb[51].mxu1  ;;  %v4222_v30 = vmul.f32 -1.442695, %v3144_v0  ;;  %v3071_v60 = vadd.f32 %v5707_v52, %v5613_v33  ;;  %v4810_v0 = vld [vmem:[%s4964_s20 + $0x1d8] sm:$0xff] }
 0x30d   : > { %v4601_v40 = vpop.eup %4600  ;;  %3941 = vst [vmem:[%s5638_s16 + $0x30] sm:$0xff] %v3869_v32  ;;  %v3706_v41 = vadd.f32 1.0, %v4599_v26  ;;  %4620 = vpow2.f32 %v4256_v12  ;;  %v5817_v43 = vpop.f32.mrb[54].mxu0  ;;  %v4239_v26 = vmul.f32 -1.442695, %v3148_v49 }
 0x30e   : > { %v4603_v45 = vpop.eup %4602  ;;  %3942 = vst [vmem:[%s5638_s16 + $0x38] sm:$0xff] %v3870_v37  ;;  %v3690_v46 = vadd.f32 1.0, %v4601_v40  ;;  %4622 = vpow2.f32 %v4271_v22  ;;  %v5820_v51 = vpop.f32.mrb[55].mxu0  ;;  %v4808_v40 = vld [vmem:[%s4964_s20 + $0x1d0] sm:$0xff] }
 0x30f   : > { %v4605_v53 = vpop.eup %4604  ;;  %v3887_v59 = vmul.f32 %v4806_v55, %v4603_v45  ;;  %4624 = vrcp.f32 %v3706_v41  ;;  %v4809_v45 = vld [vmem:[%s4964_s20 + $0x150] sm:$0xff]  ;;  %v3154_v55 = vadd.f32 %v5729_v21, %v5609_v25 }
 0x310   : > { %v4607_v44 = vpop.eup %4606  ;;  %v3888_v36 = vmul.f32 %v4807_v62, %v4605_v53  ;;  %4626 = vrcp.f32 %v3690_v46  ;;  %v4240_v53 = vmul.f32 -1.442695, %v3150_v61  ;;  %v3073_v62 = vadd.f32 %v5710_v56, %v5613_v33 }
 0x311   : > { %v4609_v4 = vpop.eup %4608  ;;  %3959 = vst [vmem:[%s5638_s16 + $0xc0] sm:$0xff] %v3887_v59  ;;  %v3655_v6 = vadd.f32 1.0, %v4607_v44  ;;  %4628 = vpow2.f32 %v4272_v29  ;;  %v5829_v17 = vpop.f32.mrb[56].mxu0  ;;  %v4273_v44 = vmul.f32 -1.442695, %v3071_v60  ;;  %v4813_v60 = vld [vmem:[%s4964_s20 + $0x48] sm:$0xff] }
 0x312   : > { %v4611_v12 = vpop.eup %4610  ;;  %3960 = vst [vmem:[%s5638_s16 + $0xc8] sm:$0xff] %v3888_v36  ;;  %v3656_v8 = vadd.f32 1.0, %v4609_v4  ;;  %4630 = vpow2.f32 %v4221_v50  ;;  %v5832_v16 = vpop.f32.mrb[57].mxu0 }
 0x313   : > { %v4613_v19 = vpop.eup %4612  ;;  %4632 = vrcp.f32 %v3655_v6  ;;  %v3673_v22 = vadd.f32 1.0, %v4611_v12  ;;  %v3156_v6 = vadd.f32 %v5732_v23, %v5609_v25  ;;  %v4811_v12 = vld [vmem:[%s4964_s20 + $0x158] sm:$0xff] }
 0x314   : > { %v4615_v47 = vpop.eup %4614  ;;  %4634 = vrcp.f32 %v3656_v8  ;;  %v3674_v1 = vadd.f32 1.0, %v4613_v19  ;;  %v3231_v8 = vadd.f32 %v5719_v7, %v5601_v13 }
 0x315   : > { %v4617_v20 = vpop.eup %4616  ;;  %4636 = vrcp.f32 %v3673_v22  ;;  %v3691_v32 = vadd.f32 1.0, %v4615_v47  ;;  %v4257_v22 = vmul.f32 -1.442695, %v3154_v55  ;;  %v3233_v47 = vadd.f32 %v5724_v14, %v5601_v13 }
 0x316   : > { %v4619_v37 = vpop.eup %4618  ;;  %v3921_v41 = vmul.f32 %v4808_v40, %v4617_v20  ;;  %4638 = vrcp.f32 %v3674_v1  ;;  %v4812_v20 = vld [vmem:[%s4964_s20 + $0x40] sm:$0xff]  ;;  %v4258_v7 = vmul.f32 -1.442695, %v3156_v6  ;;  %v4223_v14 = vmul.f32 -1.442695, %v3231_v8 }
 0x317   : > { %v4621_v29 = vpop.eup %4620  ;;  %v3905_v46 = vmul.f32 %v4809_v45, %v4619_v37  ;;  %4640 = vrcp.f32 %v3691_v32  ;;  %v3237_v40 = vadd.f32 %v5734_v28, %v5605_v18 }
 0x318   : > { %v4623_v50 = vpop.eup %4622  ;;  %3993 = vst [vmem:[%s5638_s16 + $0x1d0] sm:$0xff] %v3921_v41  ;;  %v3692_v2 = vadd.f32 1.0, %v4621_v29  ;;  %4642 = vpow2.f32 %v4222_v30  ;;  %v4274_v30 = vmul.f32 -1.442695, %v3073_v62  ;;  %v4814_v29 = vld [vmem:[%s4964_s20 + $0xd0] sm:$0xff] }
 0x319   : > { %v4625_v52 = vpop.eup %4624  ;;  %3977 = vst [vmem:[%s5638_s16 + $0x150] sm:$0xff] %v3905_v46  ;;  %v3707_v59 = vadd.f32 1.0, %v4623_v50  ;;  %4644 = vpow2.f32 %v4239_v26  ;;  %v4224_v46 = vmul.f32 -1.442695, %v3233_v47  ;;  %v3239_v50 = vadd.f32 %v5738_v34, %v5605_v18 }
 0x31a   : > { %v4627_v36 = vpop.eup %4626  ;;  %v3922_v4 = vmul.f32 %v4810_v0, %v4625_v52  ;;  %4646 = vrcp.f32 %v3692_v2  ;;  %v3243_v34 = vadd.f32 %v5748_v39, %v5609_v25 }
 0x31b   : > { %v4629_v49 = vpop.eup %4628  ;;  %v3906_v21 = vmul.f32 %v4811_v12, %v4627_v36  ;;  %4648 = vrcp.f32 %v3707_v59  ;;  %v4816_v59 = vld [vmem:[%s4964_s20 + $0x160] sm:$0xff]  ;;  %v4241_v36 = vmul.f32 -1.442695, %v3237_v40  ;;  %v4242_v6 = vmul.f32 -1.442695, %v3239_v50 }
 0x31c   : > { %v4631_v19 = vpop.eup %4630  ;;  %3994 = vst [vmem:[%s5638_s16 + $0x1d8] sm:$0xff] %v3922_v4  ;;  %v3708_v56 = vadd.f32 1.0, %v4629_v49  ;;  %4650 = vpow2.f32 %v4240_v53  ;;  %v4815_v53 = vld [vmem:[%s4964_s20 + $0xd8] sm:$0xff]  ;;  %v3245_v49 = vadd.f32 %v5753_v58, %v5609_v25 }
 0x31d   : > { %v4633_v1 = vpop.eup %4632  ;;  %3978 = vst [vmem:[%s5638_s16 + $0x158] sm:$0xff] %v3906_v21  ;;  %v3657_v23 = vadd.f32 1.0, %v4631_v19  ;;  %4652 = vpow2.f32 %v4273_v44  ;;  %v4817_v21 = vld [vmem:[%s4964_s20 + $0x168] sm:$0xff] }
 0x31e   : > { %v4635_v61 = vpop.eup %4634  ;;  %v3871_v32 = vmul.f32 %v4812_v20, %v4633_v1  ;;  %4654 = vrcp.f32 %v3708_v56  ;;  %v4818_v56 = vld [vmem:[%s4964_s20 + $0x1e0] sm:$0xff]  ;;  %v4259_v1 = vmul.f32 -1.442695, %v3243_v34  ;;  %v4260_v58 = vmul.f32 -1.442695, %v3245_v49  ;;  %v4819_v20 = vld [vmem:[%s4964_s20 + $0x1e8] sm:$0xff] }
 0x31f   : > { %v4637_v26 = vpop.eup %4636  ;;  %v3872_v37 = vmul.f32 %v4813_v60, %v4635_v61  ;;  %4656 = vrcp.f32 %v3657_v23 }
 0x320   : > { %v4639_v41 = vpop.eup %4638  ;;  %3943 = vst [vmem:[%s5638_s16 + $0x40] sm:$0xff] %v3871_v32  ;;  %v3889_v45 = vmul.f32 %v4814_v29, %v4637_v26  ;;  %4658 = vpow2.f32 %v4257_v22  ;;  %v4820_v26 = vld [vmem:[%s4964_s20 + $0x50] sm:$0xff] }
 0x321   : > { %v4641_v2 = vpop.eup %4640  ;;  %3944 = vst [vmem:[%s5638_s16 + $0x48] sm:$0xff] %v3872_v37  ;;  %v3890_v55 = vmul.f32 %v4815_v53, %v4639_v41  ;;  %4660 = vpow2.f32 %v4274_v30  ;;  %v3160_v37 = vadd.f32 %v5742_v42, %v5613_v33  ;;  %v3162_v41 = vadd.f32 %v5745_v48, %v5613_v33 }
 0x322   : > { %v4643_v52 = vpop.eup %4642  ;;  %3961 = vst [vmem:[%s5638_s16 + $0xd0] sm:$0xff] %v3889_v45  ;;  %v3907_v28 = vmul.f32 %v4816_v59, %v4641_v2  ;;  %4662 = vpow2.f32 %v4258_v7 }
 0x323   : > { %v4645_v44 = vpop.eup %4644  ;;  %3962 = vst [vmem:[%s5638_s16 + $0xd8] sm:$0xff] %v3890_v55  ;;  %v3658_v62 = vadd.f32 1.0, %v4643_v52  ;;  %4664 = vpow2.f32 %v4223_v14  ;;  %v4275_v42 = vmul.f32 -1.442695, %v3160_v37  ;;  %v3320_v55 = vadd.f32 %v5758_v3, %v5601_v13 }
 0x324   : > { %v4647_v0 = vpop.eup %4646  ;;  %3979 = vst [vmem:[%s5638_s16 + $0x160] sm:$0xff] %v3907_v28  ;;  %v3675_v4 = vadd.f32 1.0, %v4645_v44  ;;  %4666 = vpow2.f32 %v4224_v46  ;;  %v4276_v59 = vmul.f32 -1.442695, %v3162_v41  ;;  %v3322_v28 = vadd.f32 %v5763_v10, %v5601_v13 }
 0x325   : > { %v4649_v12 = vpop.eup %4648  ;;  %v3908_v8 = vmul.f32 %v4817_v21, %v4647_v0  ;;  %4668 = vrcp.f32 %v3658_v62  ;;  %v4821_v62 = vld [vmem:[%s4964_s20 + $0x58] sm:$0xff]  ;;  %v4822_v0 = vld [vmem:[%s4964_s20 + $0xe0] sm:$0xff]  ;;  %v4225_v49 = vmul.f32 -1.442695, %v3320_v55 }
 0x326   : > { %v4651_v19 = vpop.eup %4650  ;;  %v3923_v22 = vmul.f32 %v4818_v56, %v4649_v12  ;;  %4670 = vrcp.f32 %v3675_v4  ;;  %v3326_v12 = vadd.f32 %v5776_v11, %v5605_v18  ;;  %v4828_v55 = vld [vmem:[%s4964_s20 + $0x60] sm:$0xff] }
 0x327   : > { %v4653_v39 = vpop.eup %4652  ;;  %3980 = vst [vmem:[%s5638_s16 + $0x168] sm:$0xff] %v3908_v8  ;;  %v3676_v47 = vadd.f32 1.0, %v4651_v19  ;;  %4672 = vpow2.f32 %v4241_v36  ;;  %v4226_v8 = vmul.f32 -1.442695, %v3322_v28  ;;  %v3328_v19 = vadd.f32 %v5779_v38, %v5605_v18 }
 0x328   : > { %v4655_v23 = vpop.eup %4654  ;;  %3995 = vst [vmem:[%s5638_s16 + $0x1e0] sm:$0xff] %v3923_v22  ;;  %v3709_v30 = vadd.f32 1.0, %v4653_v39  ;;  %4674 = vpow2.f32 %v4242_v6  ;;  %v4823_v22 = vld [vmem:[%s4964_s20 + $0xe8] sm:$0xff] }
 0x329   : > { %v4657_v61 = vpop.eup %4656  ;;  %v3924_v32 = vmul.f32 %v4819_v20, %v4655_v23  ;;  %4676 = vrcp.f32 %v3676_v47  ;;  %v3249_v47 = vadd.f32 %v5768_v54, %v5613_v33  ;;  %v4824_v23 = vld [vmem:[%s4964_s20 + $0x1f0] sm:$0xff]  ;;  %v3251_v20 = vadd.f32 %v5773_v27, %v5613_v33 }
 0x32a   : > { %v4659_v7 = vpop.eup %4658  ;;  %v3873_v60 = vmul.f32 %v4820_v26, %v4657_v61  ;;  %4678 = vrcp.f32 %v3709_v30  ;;  %v3332_v30 = vadd.f32 %v5794_v63, %v5609_v25  ;;  %v4243_v61 = vmul.f32 -1.442695, %v3326_v12 }
 0x32b   : > { %v4661_v14 = vpop.eup %4660  ;;  %3996 = vst [vmem:[%s5638_s16 + $0x1e8] sm:$0xff] %v3924_v32  ;;  %v3693_v40 = vadd.f32 1.0, %v4659_v7  ;;  %4680 = vpow2.f32 %v4259_v1  ;;  %v4244_v7 = vmul.f32 -1.442695, %v3328_v19  ;;  %v4277_v63 = vmul.f32 -1.442695, %v3249_v47 }
 0x32c   : > { %v4663_v29 = vpop.eup %4662  ;;  %3945 = vst [vmem:[%s5638_s16 + $0x50] sm:$0xff] %v3873_v60  ;;  %v3710_v45 = vadd.f32 1.0, %v4661_v14  ;;  %4682 = vpow2.f32 %v4260_v58  ;;  %v4825_v60 = vld [vmem:[%s4964_s20 + $0x170] sm:$0xff]  ;;  %v4261_v27 = vmul.f32 -1.442695, %v3332_v30  ;;  %v3417_v30 = vadd.f32 %v5808_v5, %v5605_v18 }
 0x32d   : > { %v4665_v46 = vpop.eup %4664  ;;  %4684 = vrcp.f32 %v3693_v40  ;;  %v3694_v50 = vadd.f32 1.0, %v4663_v29  ;;  %v4826_v40 = vld [vmem:[%s4964_s20 + $0x1f8] sm:$0xff]  ;;  %v3334_v29 = vadd.f32 %v5798_v9, %v5609_v25  ;;  %v3423_v5 = vadd.f32 %v5820_v51, %v5609_v25 }
 0x32e   : > { %v4667_v2 = vpop.eup %4666  ;;  %4686 = vrcp.f32 %v3710_v45  ;;  %v3659_v53 = vadd.f32 1.0, %v4665_v46  ;;  %v4827_v46 = vld [vmem:[%s4964_s20 + $0x178] sm:$0xff] }
 0x32f   : > { %v4669_v52 = vpop.eup %4668  ;;  %4688 = vrcp.f32 %v3694_v50  ;;  %v3660_v48 = vadd.f32 1.0, %v4667_v2  ;;  %v4278_v2 = vmul.f32 -1.442695, %v3251_v20  ;;  %v4264_v51 = vmul.f32 -1.442695, %v3423_v5 }
 0x330   : > { %v4671_v44 = vpop.eup %4670  ;;  %v3874_v36 = vmul.f32 %v4821_v62, %v4669_v52  ;;  %4690 = vrcp.f32 %v3659_v53  ;;  %v3409_v53 = vadd.f32 %v5784_v35, %v5601_v13  ;;  %v4262_v62 = vmul.f32 -1.442695, %v3334_v29 }
 0x331   : > { %v4673_v34 = vpop.eup %4672  ;;  %v3891_v4 = vmul.f32 %v4822_v0, %v4671_v44  ;;  %4692 = vrcp.f32 %v3660_v48  ;;  %v3411_v35 = vadd.f32 %v5790_v57, %v5601_v13 }
 0x332   : > { %v4675_v6 = vpop.eup %4674  ;;  %3946 = vst [vmem:[%s5638_s16 + $0x58] sm:$0xff] %v3874_v36  ;;  %v3677_v3 = vadd.f32 1.0, %v4673_v34  ;;  %4694 = vpow2.f32 %v4275_v42  ;;  %v4227_v0 = vmul.f32 -1.442695, %v3409_v53 }
 0x333   : > { %v4677_v10 = vpop.eup %4676  ;;  %3963 = vst [vmem:[%s5638_s16 + $0xe0] sm:$0xff] %v3891_v4  ;;  %v3678_v21 = vadd.f32 1.0, %v4675_v6  ;;  %4696 = vpow2.f32 %v4276_v59  ;;  %v4829_v59 = vld [vmem:[%s4964_s20 + $0x68] sm:$0xff]  ;;  %v3415_v4 = vadd.f32 %v5803_v15, %v5605_v18  ;;  %v4246_v18 = vmul.f32 -1.442695, %v3417_v30  ;;  %v4843_v30 = vld [vmem:[%s4964_s20 + $0x198] sm:$0xff] }
 0x334   : > { %v4679_v56 = vpop.eup %4678  ;;  %v3892_v39 = vmul.f32 %v4823_v22, %v4677_v10  ;;  %4698 = vrcp.f32 %v3677_v3  ;;  %v4830_v3 = vld [vmem:[%s4964_s20 + $0xf0] sm:$0xff]  ;;  %v4831_v10 = vld [vmem:[%s4964_s20 + $0xf8] sm:$0xff] }
 0x335   : > { %v4681_v1 = vpop.eup %4680  ;;  %v3925_v11 = vmul.f32 %v4824_v23, %v4679_v56  ;;  %4700 = vrcp.f32 %v3678_v21  ;;  %v4245_v15 = vmul.f32 -1.442695, %v3415_v4  ;;  %v4833_v23 = vld [vmem:[%s4964_s20 + $0x188] sm:$0xff] }
 0x336   : > { %v4683_v58 = vpop.eup %4682  ;;  %3964 = vst [vmem:[%s5638_s16 + $0xe8] sm:$0xff] %v3892_v39  ;;  %v3695_v38 = vadd.f32 1.0, %v4681_v1  ;;  %4702 = vpow2.f32 %v4225_v49  ;;  %v4832_v39 = vld [vmem:[%s4964_s20 + $0x180] sm:$0xff] }
 0x337   : > { %v4685_v32 = vpop.eup %4684  ;;  %3997 = vst [vmem:[%s5638_s16 + $0x1f0] sm:$0xff] %v3925_v11  ;;  %v3696_v54 = vadd.f32 1.0, %v4683_v58  ;;  %4704 = vpow2.f32 %v4226_v8  ;;  %v4228_v8 = vmul.f32 -1.442695, %v3411_v35 }
 0x338   : > { %v4687_v26 = vpop.eup %4686  ;;  %v3909_v37 = vmul.f32 %v4825_v60, %v4685_v32  ;;  %4706 = vrcp.f32 %v3695_v38 }
 0x339   : > { %v4689_v14 = vpop.eup %4688  ;;  %v3926_v41 = vmul.f32 %v4826_v40, %v4687_v26  ;;  %4708 = vrcp.f32 %v3696_v54 }
 0x33a   : > { %v4691_v45 = vpop.eup %4690  ;;  %3981 = vst [vmem:[%s5638_s16 + $0x170] sm:$0xff] %v3909_v37  ;;  %v3910_v50 = vmul.f32 %v4827_v46, %v4689_v14  ;;  %4710 = vpow2.f32 %v4243_v61  ;;  %v3421_v61 = vadd.f32 %v5817_v43, %v5609_v25  ;;  %v3338_v14 = vadd.f32 %v5811_v31, %v5613_v33 }
 0x33b   : > { %v4693_v42 = vpop.eup %4692  ;;  %3998 = vst [vmem:[%s5638_s16 + $0x1f8] sm:$0xff] %v3926_v41  ;;  %v3875_v52 = vmul.f32 %v4828_v55, %v4691_v45  ;;  %4712 = vpow2.f32 %v4244_v7  ;;  %v4834_v41 = vld [vmem:[%s4964_s20 + $0x200] sm:$0xff]  ;;  %v4835_v45 = vld [vmem:[%s4964_s20 + $0x208] sm:$0xff]  ;;  %v3427_v55 = vadd.f32 %v5829_v17, %v5613_v33 }
 0x33c   : > { %v4695_v48 = vpop.eup %4694  ;;  %3982 = vst [vmem:[%s5638_s16 + $0x178] sm:$0xff] %v3910_v50  ;;  %v3876_v9 = vmul.f32 %v4829_v59, %v4693_v42  ;;  %4714 = vpow2.f32 %v4277_v63  ;;  %v4263_v63 = vmul.f32 -1.442695, %v3421_v61  ;;  %v4279_v42 = vmul.f32 -1.442695, %v3338_v14  ;;  %v4844_v61 = vld [vmem:[%s4964_s20 + $0x80] sm:$0xff] }
 0x33d   : > { %v4697_v28 = vpop.eup %4696  ;;  %3947 = vst [vmem:[%s5638_s16 + $0x60] sm:$0xff] %v3875_v52  ;;  %v3711_v44 = vadd.f32 1.0, %v4695_v48  ;;  %4716 = vpow2.f32 %v4261_v27  ;;  %v4836_v48 = vld [vmem:[%s4964_s20 + $0x70] sm:$0xff] }
 0x33e   : > { %v4699_v36 = vpop.eup %4698  ;;  %3948 = vst [vmem:[%s5638_s16 + $0x68] sm:$0xff] %v3876_v9  ;;  %v3712_v34 = vadd.f32 1.0, %v4697_v28  ;;  %4718 = vpow2.f32 %v4278_v2  ;;  %v3340_v2 = vadd.f32 %v5814_v24, %v5613_v33  ;;  %v3429_v9 = vadd.f32 %v5832_v16, %v5613_v33  ;;  %v4837_v24 = vld [vmem:[%s4964_s20 + $0x78] sm:$0xff]  ;;  %v4838_v16 = vld [vmem:[%s4964_s20 + $0x100] sm:$0xff] }
 0x33f   : > { %v4701_v6 = vpop.eup %4700  ;;  %v3893_v49 = vmul.f32 %v4830_v3, %v4699_v36  ;;  %4720 = vrcp.f32 %v3711_v44 }
 0x340   : > { %v4703_v12 = vpop.eup %4702  ;;  %v3894_v21 = vmul.f32 %v4831_v10, %v4701_v6  ;;  %4722 = vrcp.f32 %v3712_v34  ;;  %v4280_v36 = vmul.f32 -1.442695, %v3340_v2  ;;  %v4282_v6 = vmul.f32 -1.442695, %v3429_v9 }
 0x341   : > { %v4705_v13 = vpop.eup %4704  ;;  %3965 = vst [vmem:[%s5638_s16 + $0xf0] sm:$0xff] %v3893_v49  ;;  %v3661_v57 = vadd.f32 1.0, %v4703_v12  ;;  %4724 = vpow2.f32 %v4262_v62  ;;  %v4839_v49 = vld [vmem:[%s4964_s20 + $0x108] sm:$0xff] }
 0x342   : > { %v4707_v19 = vpop.eup %4706  ;;  %3966 = vst [vmem:[%s5638_s16 + $0xf8] sm:$0xff] %v3894_v21  ;;  %v3662_v56 = vadd.f32 1.0, %v4705_v13  ;;  %4726 = vpow2.f32 %v4227_v0  ;;  %v4281_v0 = vmul.f32 -1.442695, %v3427_v55  ;;  %v4840_v21 = vld [vmem:[%s4964_s20 + $0x210] sm:$0xff] }
 0x343   : > { %v4709_v22 = vpop.eup %4708  ;;  %v3911_v47 = vmul.f32 %v4832_v39, %v4707_v19  ;;  %4728 = vrcp.f32 %v3661_v57 }
 0x344   : > { %v4711_v1 = vpop.eup %4710  ;;  %v3912_v11 = vmul.f32 %v4833_v23, %v4709_v22  ;;  %4730 = vrcp.f32 %v3662_v56 }
 0x345   : > { %v4713_v58 = vpop.eup %4712  ;;  %3983 = vst [vmem:[%s5638_s16 + $0x180] sm:$0xff] %v3911_v47  ;;  %v3679_v38 = vadd.f32 1.0, %v4711_v1  ;;  %4732 = vpow2.f32 %v4228_v8  ;;  %v4841_v8 = vld [vmem:[%s4964_s20 + $0x190] sm:$0xff] }
 0x346   : > { %v4715_v20 = vpop.eup %4714  ;;  %3984 = vst [vmem:[%s5638_s16 + $0x188] sm:$0xff] %v3912_v11  ;;  %v3680_v32 = vadd.f32 1.0, %v4713_v58  ;;  %4734 = vpow2.f32 %v4245_v15  ;;  %v4842_v15 = vld [vmem:[%s4964_s20 + $0x218] sm:$0xff] }
 0x347   : > { %v4717_v54 = vpop.eup %4716  ;;  %4736 = vrcp.f32 %v3679_v38  ;;  %v3713_v7 = vadd.f32 1.0, %v4715_v20 }
 0x348   : > { %v4719_v26 = vpop.eup %4718  ;;  %4738 = vrcp.f32 %v3680_v32  ;;  %v3697_v60 = vadd.f32 1.0, %v4717_v54 }
 0x349   : > { %v4721_v37 = vpop.eup %4720  ;;  %4740 = vrcp.f32 %v3713_v7  ;;  %v3714_v43 = vadd.f32 1.0, %v4719_v26 }
 0x34a   : > { %v4723_v40 = vpop.eup %4722  ;;  %v3927_v27 = vmul.f32 %v4834_v41, %v4721_v37  ;;  %4742 = vrcp.f32 %v3697_v60 }
 0x34b   : > { %v4725_v29 = vpop.eup %4724  ;;  %v3928_v46 = vmul.f32 %v4835_v45, %v4723_v40  ;;  %4744 = vrcp.f32 %v3714_v43  ;;  %v4846_v43 = vld [vmem:[%s4964_s20 + $0x110] sm:$0xff] }
 0x34c   : > { %v4727_v50 = vpop.eup %4726  ;;  %3999 = vst [vmem:[%s5638_s16 + $0x200] sm:$0xff] %v3927_v27  ;;  %v3698_v25 = vadd.f32 1.0, %v4725_v29  ;;  %4746 = vpow2.f32 %v4246_v18  ;;  %v4845_v18 = vld [vmem:[%s4964_s20 + $0x88] sm:$0xff] }
 0x34d   : > { %v4729_v31 = vpop.eup %4728  ;;  %4000 = vst [vmem:[%s5638_s16 + $0x208] sm:$0xff] %v3928_v46  ;;  %v3663_v53 = vadd.f32 1.0, %v4727_v50  ;;  %4748 = vpow2.f32 %v4263_v63  ;;  %v4847_v50 = vld [vmem:[%s4964_s20 + $0x118] sm:$0xff] }
 0x34e   : > { %v4731_v52 = vpop.eup %4730  ;;  %v3877_v59 = vmul.f32 %v4836_v48, %v4729_v31  ;;  %4750 = vrcp.f32 %v3698_v25 }
 0x34f   : > { %v4733_v28 = vpop.eup %4732  ;;  %v3878_v44 = vmul.f32 %v4837_v24, %v4731_v52  ;;  %4752 = vrcp.f32 %v3663_v53  ;;  %v4850_v52 = vld [vmem:[%s4964_s20 + $0x220] sm:$0xff] }
 0x350   : > { %v4735_v62 = vpop.eup %4734  ;;  %3949 = vst [vmem:[%s5638_s16 + $0x70] sm:$0xff] %v3877_v59  ;;  %v3664_v35 = vadd.f32 1.0, %v4733_v28  ;;  %4754 = vpow2.f32 %v4264_v51  ;;  %v4848_v51 = vld [vmem:[%s4964_s20 + $0x1a0] sm:$0xff]  ;;  %v4851_v28 = vld [vmem:[%s4964_s20 + $0x228] sm:$0xff] }
 0x351   : > { %v4737_v17 = vpop.eup %4736  ;;  %3950 = vst [vmem:[%s5638_s16 + $0x78] sm:$0xff] %v3878_v44  ;;  %v3681_v34 = vadd.f32 1.0, %v4735_v62  ;;  %4756 = vpow2.f32 %v4279_v42  ;;  %v4849_v42 = vld [vmem:[%s4964_s20 + $0x1a8] sm:$0xff]  ;;  %v4852_v62 = vld [vmem:[%s4964_s20 + $0x230] sm:$0xff] }
 0x352   : > { %v4739_v33 = vpop.eup %4738  ;;  %v3895_v4 = vmul.f32 %v4838_v16, %v4737_v17  ;;  %4758 = vrcp.f32 %v3664_v35 }
 0x353   : > { %v4741_v3 = vpop.eup %4740  ;;  %v3896_v12 = vmul.f32 %v4839_v49, %v4739_v33  ;;  %4760 = vrcp.f32 %v3681_v34 }
 0x354   : > { %v4743_v10 = vpop.eup %4742  ;;  %3967 = vst [vmem:[%s5638_s16 + $0x100] sm:$0xff] %v3895_v4  ;;  %v3929_v13 = vmul.f32 %v4840_v21, %v4741_v3  ;;  %4762 = vpow2.f32 %v4280_v36  ;;  %v4853_v36 = vld [vmem:[%s4964_s20 + $0x238] sm:$0xff] }
 0x355   : > { %v4745_v57 = vpop.eup %4744  ;;  %3968 = vst [vmem:[%s5638_s16 + $0x108] sm:$0xff] %v3896_v12  ;;  %v3913_v19 = vmul.f32 %v4841_v8, %v4743_v10  ;;  %4764 = vpow2.f32 %v4281_v0 }
 0x356   : > { %v4747_v56 = vpop.eup %4746  ;;  %4001 = vst [vmem:[%s5638_s16 + $0x210] sm:$0xff] %v3929_v13  ;;  %v3930_v22 = vmul.f32 %v4842_v15, %v4745_v57  ;;  %4766 = vpow2.f32 %v4282_v6 }
 0x357   : > { %v4749_v39 = vpop.eup %4748  ;;  %3985 = vst [vmem:[%s5638_s16 + $0x190] sm:$0xff] %v3913_v19  ;;  %v3682_v47 = vadd.f32 1.0, %v4747_v56 }
 0x358   : > { %v4751_v1 = vpop.eup %4750  ;;  %4002 = vst [vmem:[%s5638_s16 + $0x218] sm:$0xff] %v3930_v22  ;;  %v3699_v23 = vadd.f32 1.0, %v4749_v39 }
 0x359   : > { %v4753_v11 = vpop.eup %4752  ;;  %v3914_v58 = vmul.f32 %v4843_v30, %v4751_v1  ;;  %4768 = vrcp.f32 %v3682_v47 }
 0x35a   : > { %v4755_v38 = vpop.eup %4754  ;;  %v3879_v20 = vmul.f32 %v4844_v61, %v4753_v11  ;;  %4770 = vrcp.f32 %v3699_v23 }
 0x35b   : > { %v4757_v32 = vpop.eup %4756  ;;  %3986 = vst [vmem:[%s5638_s16 + $0x198] sm:$0xff] %v3914_v58  ;;  %v3700_v54 = vadd.f32 1.0, %v4755_v38 }
 0x35c   : > { %v4759_v7 = vpop.eup %4758  ;;  %3951 = vst [vmem:[%s5638_s16 + $0x80] sm:$0xff] %v3879_v20  ;;  %v3715_v26 = vadd.f32 1.0, %v4757_v32 }
 0x35d   : > { %v4761_v60 = vpop.eup %4760  ;;  %v3880_v5 = vmul.f32 %v4845_v18, %v4759_v7  ;;  %4772 = vrcp.f32 %v3700_v54 }
 0x35e   : > { %v4763_v37 = vpop.eup %4762  ;;  %v3897_v63 = vmul.f32 %v4846_v43, %v4761_v60  ;;  %4774 = vrcp.f32 %v3715_v26 }
 0x35f   : > { %v4765_v14 = vpop.eup %4764  ;;  %3952 = vst [vmem:[%s5638_s16 + $0x88] sm:$0xff] %v3880_v5  ;;  %v3716_v40 = vadd.f32 1.0, %v4763_v37 }
 0x360   : > { %v4767_v41 = vpop.eup %4766  ;;  %3969 = vst [vmem:[%s5638_s16 + $0x110] sm:$0xff] %v3897_v63  ;;  %v3717_v27 = vadd.f32 1.0, %v4765_v14 }
 0x361   : > { %4776 = vrcp.f32 %v3716_v40  ;;  %v3718_v29 = vadd.f32 1.0, %v4767_v41 }
 0x362   : > { %4778 = vrcp.f32 %v3717_v27 }
 0x363   : > { %v4769_v45 = vpop.eup %4768  ;;  %4780 = vrcp.f32 %v3718_v29 }
 0x364   : > { %v4771_v46 = vpop.eup %4770  ;;  %v3898_v25 = vmul.f32 %v4847_v50, %v4769_v45 }
 0x365   : > { %v3915_v2 = vmul.f32 %v4848_v51, %v4771_v46 }
 0x366   : > { %3970 = vst [vmem:[%s5638_s16 + $0x118] sm:$0xff] %v3898_v25 }
 0x367   : > { %v4773_v31 = vpop.eup %4772  ;;  %3987 = vst [vmem:[%s5638_s16 + $0x1a0] sm:$0xff] %v3915_v2 }
 0x368   : > { %v4775_v53 = vpop.eup %4774  ;;  %v3916_v55 = vmul.f32 %v4849_v42, %v4773_v31 }
 0x369   : > { %v3931_v48 = vmul.f32 %v4850_v52, %v4775_v53 }
 0x36a   : > { %3988 = vst [vmem:[%s5638_s16 + $0x1a8] sm:$0xff] %v3916_v55 }
 0x36b   : > { %v4777_v59 = vpop.eup %4776  ;;  %4003 = vst [vmem:[%s5638_s16 + $0x220] sm:$0xff] %v3931_v48 }
 0x36c   : > { %v4779_v9 = vpop.eup %4778  ;;  %v3932_v24 = vmul.f32 %v4851_v28, %v4777_v59 }
 0x36d   : > { %v4781_v44 = vpop.eup %4780  ;;  %v3933_v35 = vmul.f32 %v4852_v62, %v4779_v9 }
 0x36e   : > { %4004 = vst [vmem:[%s5638_s16 + $0x228] sm:$0xff] %v3932_v24  ;;  %v3934_v17 = vmul.f32 %v4853_v36, %v4781_v44 }
 0x36f   : > { %4005 = vst [vmem:[%s5638_s16 + $0x230] sm:$0xff] %v3933_v35 }
 0x370   : > { %4006 = vst [vmem:[%s5638_s16 + $0x238] sm:$0xff] %v3934_v17 }
 0x371 PF: > { %s19_s11 = sadd.s32 1, %s4876_s11   ;;  %s6007_s30 = smov %s4872_s10 }
 0x372   : > { %p16_p5 = scmp.ge.s32.totalorder %s19_s11, 4   ;;  %s6008_s10 = smov %s6010_s12 }
 0x374   :  { %18 = sbr.rel (!%p16_p5) target bundleno = 2 (0x2), region = 92 }

</bundles_post_ra>
